<compile_context>
chip_gen: v7x
topology: tpu7x:2x2x1
jax: 0.10.0
libtpu: 0.0.40
codegen_flags: <defaults>
</compile_context>

<pallas_src>
import math
import numpy as np
import jax
import jax.numpy as jnp
from jax.experimental import pallas as pl
from jax.experimental.pallas import tpu as pltpu


def _round_up(x, m):
    return ((x + m - 1) // m) * m


# --------------------------------------------------------------------------
# Fused 2-layer NGCF kernel (single grid step, everything resident in VMEM)
#
# per layer:
#   agg  = A @ x                                   (message pre-aggregation)
#   h    = (x + agg) @ W1t + (agg * x) @ W2t + [(1+deg)*b1 + deg*b2]
#   h    = leaky_relu(h, 0.2)
#   out  = h / max(||h||_2, eps)                   (F.normalize, dim=1)
# --------------------------------------------------------------------------
def ngcf_fused_kernel(a_ref, x0_ref,
                      w1a_ref, w2a_ref, ba_ref,
                      w1b_ref, w2b_ref, bb_ref,
                      out1_ref, out2_ref):
    a = a_ref[...]                                   # (N_pad, N_pad) bf16

    def layer(x, w1, w2, bias):
        # aggregation: agg[dst] = sum_e norm_e * x[src]   (bf16 MXU dot, f32 acc)
        agg = jnp.dot(a, x.astype(jnp.bfloat16),
                      preferred_element_type=jnp.float32)
        # two summed dots instead of a lane-axis concat (review item #1)
        h = (jnp.dot(x + agg, w1, preferred_element_type=jnp.float32)
             + jnp.dot(agg * x, w2, preferred_element_type=jnp.float32)
             + bias)                                 # bias = (1+deg)*b1 + deg*b2
        h = jnp.where(h > 0.0, h, 0.2 * h)           # LeakyReLU(0.2)
        # TODO(synk): nn.Dropout is identity in eval mode (not applied here).
        sumsq = jnp.sum(h * h, axis=1, keepdims=True)
        # F.normalize(h, dim=1, p=2) -> rsqrt lowers to the EUP slot
        return h * jax.lax.rsqrt(jnp.maximum(sumsq, 1e-24))

    h1 = layer(x0_ref[...], w1a_ref[...], w2a_ref[...], ba_ref[...])
    out1_ref[...] = h1                               # layer-1 activations (lane-dense 128)
    out2_ref[...] = layer(h1, w1b_ref[...], w2b_ref[...], bb_ref[...])


def ngcf_fused(A_bf16, x0, w1a, w2a, ba, w1b, w2b, bb):
    N_pad, D0 = x0.shape
    DP = w1a.shape[1]

    def spec(shape):
        return pl.BlockSpec(shape, lambda i: (0, 0))

    return pl.pallas_call(
        ngcf_fused_kernel,
        out_shape=(jax.ShapeDtypeStruct((N_pad, DP), jnp.float32),
                   jax.ShapeDtypeStruct((N_pad, DP), jnp.float32)),
        grid=(1,),
        in_specs=[spec((N_pad, N_pad)),                                 # bf16 adjacency
                  spec((N_pad, D0)),                                    # stacked node feats
                  spec((D0, DP)), spec((D0, DP)), spec((N_pad, DP)),    # layer-1 W1t/W2t/bias
                  spec((DP, DP)), spec((DP, DP)), spec((N_pad, DP))],   # layer-2 W1t/W2t/bias
        out_specs=(spec((N_pad, DP)), spec((N_pad, DP))),
        compiler_params=pltpu.CompilerParams(
            dimension_semantics=("arbitrary",)),
    )(A_bf16, x0, w1a, w2a, ba, w1b, w2b, bb)


# --------------------------------------------------------------------------
# Parameter init (deterministic, xavier-uniform like torch.nn.init)
# --------------------------------------------------------------------------
def xavier_uniform(key, shape):
    fan_in, fan_out = shape
    bound = math.sqrt(6.0 / (fan_in + fan_out))
    return jax.random.uniform(key, shape, jnp.float32, -bound, bound)


def build_graph(n_user, n_item, n_pad):
    """Deterministic small bipartite graph: user u -> items (2u+k)%n_item, k=0..2.

    Returns the block-bipartite dense normalized adjacency A[dst_global, src_global]
    (users = [0, n_user), items = [n_user, n_user+n_item)), zero-padded to
    (n_pad, n_pad), float32.
    """
    src_u = np.repeat(np.arange(n_user), 3)
    dst_i = (2 * np.repeat(np.arange(n_user), 3)
             + np.tile(np.arange(3), n_user)) % n_item

    deg_user = np.bincount(src_u, minlength=n_user).astype(np.float32)  # out-deg (u->i)
    deg_item = np.bincount(dst_i, minlength=n_item).astype(np.float32)  # in-deg  (u->i)

    # edge norms: (src_degree * dst_degree)^{-0.5}  (symmetric for both directions)
    norm = 1.0 / np.sqrt(deg_user[src_u] * deg_item[dst_i])

    A = np.zeros((n_pad, n_pad), np.float32)
    np.add.at(A, (n_user + dst_i, src_u), norm)       # user -> item messages
    np.add.at(A, (src_u, n_user + dst_i), norm)       # item -> user messages
    return jnp.asarray(A)


def ngcf_forward(x_user, x_item, A_f32, layers_params,
                 users, pos_items, neg_items):
    n_user, in_size = x_user.shape
    n_item = x_item.shape[0]
    N_pad = A_f32.shape[0]
    pad = N_pad - (n_user + n_item)

    # graph constants hoisted out of the kernel
    deg = jnp.sum(A_f32, axis=1, keepdims=True)                      # (N_pad, 1)
    (w1a, w2a, b1a, b2a, d1), (w1b, w2b, b1b, b2b, d2) = layers_params
    bias_a = (1.0 + deg) * b1a + deg * b2a                           # (N_pad, DP)
    bias_b = (1.0 + deg) * b1b + deg * b2b

    # stacked, zero-padded node features (users then items)
    x0 = jnp.concatenate(
        [x_user, x_item, jnp.zeros((pad, in_size), jnp.float32)], axis=0)

    h1_pad, h2_pad = ngcf_fused(A_f32.astype(jnp.bfloat16), x0,
                                w1a, w2a, bias_a, w1b, w2b, bias_b)
    h1 = h1_pad[:, :d1]
    h2 = h2_pad[:, :d2]

    user_embd = jnp.concatenate(
        [x_user, h1[:n_user], h2[:n_user]], axis=1)
    item_embd = jnp.concatenate(
        [x_item, h1[n_user:n_user + n_item], h2[n_user:n_user + n_item]], axis=1)

    u_g_embeddings = user_embd[users, :]
    pos_i_g_embeddings = item_embd[pos_items, :]
    neg_i_g_embeddings = item_embd[neg_items, :]
    return u_g_embeddings, pos_i_g_embeddings, neg_i_g_embeddings


if __name__ == "__main__":
    n_user, n_item = 16, 24
    in_size = 32
    layer_size = [32, 16]
    DP = 128                              # lane-dense padded output width

    N = n_user + n_item
    N_pad = _round_up(N, 128)             # adjacency lane axis 128-dense

    A_full = build_graph(n_user, n_item, N_pad)

    key = jax.random.PRNGKey(0)
    k_feat_u, k_feat_i, k_l1, k_l2 = jax.random.split(key, 4)

    # node embeddings (nn.ParameterDict with xavier_uniform init)
    x_user = xavier_uniform(k_feat_u, (n_user, in_size))
    x_item = xavier_uniform(k_feat_i, (n_item, in_size))

    # per-layer Linear params, stored transposed as (in, out), zero-padded to
    # lane-dense (in_pad, 128); biases init 0 (torch constant_(bias, 0)).
    dims = [in_size] + layer_size
    layers_params = []
    for li, k_layer in enumerate([k_l1, k_l2]):
        din, dout = dims[li], dims[li + 1]
        din_pad = in_size if li == 0 else DP    # layer-2 input lanes are padded to DP
        kW1, kW2 = jax.random.split(k_layer)
        W1t = xavier_uniform(kW1, (din, dout))
        W2t = xavier_uniform(kW2, (din, dout))
        W1t_p = jnp.zeros((din_pad, DP), jnp.float32).at[:din, :dout].set(W1t)
        W2t_p = jnp.zeros((din_pad, DP), jnp.float32).at[:din, :dout].set(W2t)
        b1 = jnp.zeros((1, DP), jnp.float32)
        b2 = jnp.zeros((1, DP), jnp.float32)
        layers_params.append((W1t_p, W2t_p, b1, b2, dout))

    users = jnp.array([0, 3, 5, 7, 9, 11, 13, 15], dtype=jnp.int32)
    pos_items = jnp.array([1, 4, 6, 8, 10, 12, 14, 20], dtype=jnp.int32)
    neg_items = jnp.array([2, 5, 7, 9, 11, 13, 15, 23], dtype=jnp.int32)

    u_g, pos_g, neg_g = ngcf_forward(
        x_user, x_item, A_full, layers_params, users, pos_items, neg_items)
    jax.block_until_ready((u_g, pos_g, neg_g))

    emb_dim = in_size + sum(layer_size)
    assert u_g.shape == (8, emb_dim)
    assert pos_g.shape == (8, emb_dim)
    assert neg_g.shape == (8, emb_dim)
    print("KERNEL_OK")
</pallas_src>

<mosaic_0001>
module attributes {stable_mosaic.version = 11 : i64} {
  func.func @ngcf_fused_kernel(%arg0: i32, %arg1: memref<128x128xbf16, #tpu.memory_space<vmem>>, %arg2: memref<128x32xf32, #tpu.memory_space<vmem>>, %arg3: memref<32x128xf32, #tpu.memory_space<vmem>>, %arg4: memref<32x128xf32, #tpu.memory_space<vmem>>, %arg5: memref<128x128xf32, #tpu.memory_space<vmem>>, %arg6: memref<128x128xf32, #tpu.memory_space<vmem>>, %arg7: memref<128x128xf32, #tpu.memory_space<vmem>>, %arg8: memref<128x128xf32, #tpu.memory_space<vmem>>, %arg9: memref<128x128xf32, #tpu.memory_space<vmem>>, %arg10: memref<128x128xf32, #tpu.memory_space<vmem>>) attributes {dimension_semantics = [#tpu.dimension_semantics<arbitrary>], iteration_bounds = array<i64: 1>, scalar_prefetch = 0 : i64, scratch_operands = 0 : i64, tpu.core_type = #tpu.core_type<tc>, window_params = [{pipeline_mode = #tpu.pipeline_mode<synchronous>, transform_indices = @transform_0, window_bounds = array<i64: 128, 128>}, {pipeline_mode = #tpu.pipeline_mode<synchronous>, transform_indices = @transform_1, window_bounds = array<i64: 128, 32>}, {pipeline_mode = #tpu.pipeline_mode<synchronous>, transform_indices = @transform_2, window_bounds = array<i64: 32, 128>}, {pipeline_mode = #tpu.pipeline_mode<synchronous>, transform_indices = @transform_3, window_bounds = array<i64: 32, 128>}, {pipeline_mode = #tpu.pipeline_mode<synchronous>, transform_indices = @transform_4, window_bounds = array<i64: 128, 128>}, {pipeline_mode = #tpu.pipeline_mode<synchronous>, transform_indices = @transform_5, window_bounds = array<i64: 128, 128>}, {pipeline_mode = #tpu.pipeline_mode<synchronous>, transform_indices = @transform_6, window_bounds = array<i64: 128, 128>}, {pipeline_mode = #tpu.pipeline_mode<synchronous>, transform_indices = @transform_7, window_bounds = array<i64: 128, 128>}, {pipeline_mode = #tpu.pipeline_mode<synchronous>, transform_indices = @transform_8, window_bounds = array<i64: 128, 128>}, {pipeline_mode = #tpu.pipeline_mode<synchronous>, transform_indices = @transform_9, window_bounds = array<i64: 128, 128>}]} {
    %c0 = arith.constant 0 : index
    %c0_0 = arith.constant 0 : index
    %0 = vector.load %arg1[%c0, %c0_0] : memref<128x128xbf16, #tpu.memory_space<vmem>>, vector<128x128xbf16>
    %c0_1 = arith.constant 0 : index
    %c0_2 = arith.constant 0 : index
    %1 = vector.load %arg2[%c0_1, %c0_2] : memref<128x32xf32, #tpu.memory_space<vmem>>, vector<128x32xf32>
    %c0_3 = arith.constant 0 : index
    %c0_4 = arith.constant 0 : index
    %2 = vector.load %arg3[%c0_3, %c0_4] : memref<32x128xf32, #tpu.memory_space<vmem>>, vector<32x128xf32>
    %c0_5 = arith.constant 0 : index
    %c0_6 = arith.constant 0 : index
    %3 = vector.load %arg4[%c0_5, %c0_6] : memref<32x128xf32, #tpu.memory_space<vmem>>, vector<32x128xf32>
    %c0_7 = arith.constant 0 : index
    %c0_8 = arith.constant 0 : index
    %4 = vector.load %arg5[%c0_7, %c0_8] : memref<128x128xf32, #tpu.memory_space<vmem>>, vector<128x128xf32>
    %5 = arith.truncf %1 : vector<128x32xf32> to vector<128x32xbf16>
    %cst = arith.constant dense<0.000000e+00> : vector<128x32xf32>
    %6 = tpu.matmul %0, %5, %cst {dimension_numbers = #tpu.dot_dimension_numbers<[1], [0], [0], [1], [0, 0, 1, 1], [], []>} : vector<128x128xbf16>, vector<128x32xbf16>, vector<128x32xf32> -> vector<128x32xf32>
    %7 = arith.addf %1, %6 : vector<128x32xf32>
    %cst_9 = arith.constant dense<0.000000e+00> : vector<128x128xf32>
    %8 = tpu.matmul %7, %2, %cst_9 {dimension_numbers = #tpu.dot_dimension_numbers<[1], [0], [0], [1], [0, 0, 1, 1], [], []>} : vector<128x32xf32>, vector<32x128xf32>, vector<128x128xf32> -> vector<128x128xf32>
    %9 = arith.mulf %6, %1 : vector<128x32xf32>
    %cst_10 = arith.constant dense<0.000000e+00> : vector<128x128xf32>
    %10 = tpu.matmul %9, %3, %cst_10 {dimension_numbers = #tpu.dot_dimension_numbers<[1], [0], [0], [1], [0, 0, 1, 1], [], []>} : vector<128x32xf32>, vector<32x128xf32>, vector<128x128xf32> -> vector<128x128xf32>
    %11 = arith.addf %8, %10 : vector<128x128xf32>
    %12 = arith.addf %11, %4 : vector<128x128xf32>
    %cst_11 = arith.constant 0.000000e+00 : f32
    %13 = vector.broadcast %cst_11 : f32 to vector<128x128xf32>
    %14 = arith.cmpf ogt, %12, %13 : vector<128x128xf32>
    %cst_12 = arith.constant 2.000000e-01 : f32
    %15 = vector.broadcast %cst_12 : f32 to vector<128x128xf32>
    %16 = arith.mulf %15, %12 : vector<128x128xf32>
    %17 = arith.select %14, %12, %16 : vector<128x128xi1>, vector<128x128xf32>
    %18 = arith.mulf %17, %17 : vector<128x128xf32>
    %cst_13 = arith.constant dense<0.000000e+00> : vector<128xf32>
    %19 = vector.multi_reduction <add>, %18, %cst_13 [1] : vector<128x128xf32> to vector<128xf32>
    %20 = vector.shape_cast %19 : vector<128xf32> to vector<128x1xf32>
    %cst_14 = arith.constant 1.000000e-24 : f32
    %21 = vector.broadcast %cst_14 : f32 to vector<128x1xf32>
    %22 = arith.maximumf %20, %21 : vector<128x1xf32>
    %23 = math.rsqrt %22 : vector<128x1xf32>
    %24 = vector.broadcast %23 : vector<128x1xf32> to vector<128x128xf32>
    %25 = arith.mulf %17, %24 : vector<128x128xf32>
    %c0_15 = arith.constant 0 : index
    %c0_16 = arith.constant 0 : index
    %26 = vector.load %arg9[%c0_15, %c0_16] : memref<128x128xf32, #tpu.memory_space<vmem>>, vector<128x128xf32>
    tpu.vector_store %arg9[%c0_15, %c0_16], %25 {strides = array<i32>} : memref<128x128xf32, #tpu.memory_space<vmem>>, vector<128x128xf32>,
    %c0_17 = arith.constant 0 : index
    %c0_18 = arith.constant 0 : index
    %27 = vector.load %arg6[%c0_17, %c0_18] : memref<128x128xf32, #tpu.memory_space<vmem>>, vector<128x128xf32>
    %c0_19 = arith.constant 0 : index
    %c0_20 = arith.constant 0 : index
    %28 = vector.load %arg7[%c0_19, %c0_20] : memref<128x128xf32, #tpu.memory_space<vmem>>, vector<128x128xf32>
    %c0_21 = arith.constant 0 : index
    %c0_22 = arith.constant 0 : index
    %29 = vector.load %arg8[%c0_21, %c0_22] : memref<128x128xf32, #tpu.memory_space<vmem>>, vector<128x128xf32>
    %30 = arith.truncf %25 : vector<128x128xf32> to vector<128x128xbf16>
    %cst_23 = arith.constant dense<0.000000e+00> : vector<128x128xf32>
    %31 = tpu.matmul %0, %30, %cst_23 {dimension_numbers = #tpu.dot_dimension_numbers<[1], [0], [0], [1], [0, 0, 1, 1], [], []>} : vector<128x128xbf16>, vector<128x128xbf16>, vector<128x128xf32> -> vector<128x128xf32>
    %32 = arith.addf %25, %31 : vector<128x128xf32>
    %cst_24 = arith.constant dense<0.000000e+00> : vector<128x128xf32>
    %33 = tpu.matmul %32, %27, %cst_24 {dimension_numbers = #tpu.dot_dimension_numbers<[1], [0], [0], [1], [0, 0, 1, 1], [], []>} : vector<128x128xf32>, vector<128x128xf32>, vector<128x128xf32> -> vector<128x128xf32>
    %34 = arith.mulf %31, %25 : vector<128x128xf32>
    %cst_25 = arith.constant dense<0.000000e+00> : vector<128x128xf32>
    %35 = tpu.matmul %34, %28, %cst_25 {dimension_numbers = #tpu.dot_dimension_numbers<[1], [0], [0], [1], [0, 0, 1, 1], [], []>} : vector<128x128xf32>, vector<128x128xf32>, vector<128x128xf32> -> vector<128x128xf32>
    %36 = arith.addf %33, %35 : vector<128x128xf32>
    %37 = arith.addf %36, %29 : vector<128x128xf32>
    %cst_26 = arith.constant 0.000000e+00 : f32
    %38 = vector.broadcast %cst_26 : f32 to vector<128x128xf32>
    %39 = arith.cmpf ogt, %37, %38 : vector<128x128xf32>
    %cst_27 = arith.constant 2.000000e-01 : f32
    %40 = vector.broadcast %cst_27 : f32 to vector<128x128xf32>
    %41 = arith.mulf %40, %37 : vector<128x128xf32>
    %42 = arith.select %39, %37, %41 : vector<128x128xi1>, vector<128x128xf32>
    %43 = arith.mulf %42, %42 : vector<128x128xf32>
    %cst_28 = arith.constant dense<0.000000e+00> : vector<128xf32>
    %44 = vector.multi_reduction <add>, %43, %cst_28 [1] : vector<128x128xf32> to vector<128xf32>
    %45 = vector.shape_cast %44 : vector<128xf32> to vector<128x1xf32>
    %cst_29 = arith.constant 1.000000e-24 : f32
    %46 = vector.broadcast %cst_29 : f32 to vector<128x1xf32>
    %47 = arith.maximumf %45, %46 : vector<128x1xf32>
    %48 = math.rsqrt %47 : vector<128x1xf32>
    %49 = vector.broadcast %48 : vector<128x1xf32> to vector<128x128xf32>
    %50 = arith.mulf %42, %49 : vector<128x128xf32>
    %c0_30 = arith.constant 0 : index
    %c0_31 = arith.constant 0 : index
    %51 = vector.load %arg10[%c0_30, %c0_31] : memref<128x128xf32, #tpu.memory_space<vmem>>, vector<128x128xf32>
    tpu.vector_store %arg10[%c0_30, %c0_31], %50 {strides = array<i32>} : memref<128x128xf32, #tpu.memory_space<vmem>>, vector<128x128xf32>,
    return
  }
  func.func @transform_0(%arg0: i32) -> (i32, i32) {
    %c0_i32 = arith.constant 0 : i32
    %c0_i32_0 = arith.constant 0 : i32
    %c0_i32_1 = arith.constant 0 : i32
    return %c0_i32, %c0_i32_0 : i32, i32
  }
  func.func @transform_1(%arg0: i32) -> (i32, i32) {
    %c0_i32 = arith.constant 0 : i32
    %c0_i32_0 = arith.constant 0 : i32
    %c0_i32_1 = arith.constant 0 : i32
    return %c0_i32, %c0_i32_0 : i32, i32
  }
  func.func @transform_2(%arg0: i32) -> (i32, i32) {
    %c0_i32 = arith.constant 0 : i32
    %c0_i32_0 = arith.constant 0 : i32
    %c0_i32_1 = arith.constant 0 : i32
    return %c0_i32, %c0_i32_0 : i32, i32
  }
  func.func @transform_3(%arg0: i32) -> (i32, i32) {
    %c0_i32 = arith.constant 0 : i32
    %c0_i32_0 = arith.constant 0 : i32
    %c0_i32_1 = arith.constant 0 : i32
    return %c0_i32, %c0_i32_0 : i32, i32
  }
  func.func @transform_4(%arg0: i32) -> (i32, i32) {
    %c0_i32 = arith.constant 0 : i32
    %c0_i32_0 = arith.constant 0 : i32
    %c0_i32_1 = arith.constant 0 : i32
    return %c0_i32, %c0_i32_0 : i32, i32
  }
  func.func @transform_5(%arg0: i32) -> (i32, i32) {
    %c0_i32 = arith.constant 0 : i32
    %c0_i32_0 = arith.constant 0 : i32
    %c0_i32_1 = arith.constant 0 : i32
    return %c0_i32, %c0_i32_0 : i32, i32
  }
  func.func @transform_6(%arg0: i32) -> (i32, i32) {
    %c0_i32 = arith.constant 0 : i32
    %c0_i32_0 = arith.constant 0 : i32
    %c0_i32_1 = arith.constant 0 : i32
    return %c0_i32, %c0_i32_0 : i32, i32
  }
  func.func @transform_7(%arg0: i32) -> (i32, i32) {
    %c0_i32 = arith.constant 0 : i32
    %c0_i32_0 = arith.constant 0 : i32
    %c0_i32_1 = arith.constant 0 : i32
    return %c0_i32, %c0_i32_0 : i32, i32
  }
  func.func @transform_8(%arg0: i32) -> (i32, i32) {
    %c0_i32 = arith.constant 0 : i32
    %c0_i32_0 = arith.constant 0 : i32
    %c0_i32_1 = arith.constant 0 : i32
    return %c0_i32, %c0_i32_0 : i32, i32
  }
  func.func @transform_9(%arg0: i32) -> (i32, i32) {
    %c0_i32 = arith.constant 0 : i32
    %c0_i32_0 = arith.constant 0 : i32
    %c0_i32_1 = arith.constant 0 : i32
    return %c0_i32, %c0_i32_0 : i32, i32
  }
}

</mosaic_0001>

<bundles_post_ra>
// kernel: tpu_custom_call.1
= control target key start
LH: loop header
LB: loop body
LE: loop exit
PB: predicated region body
PF: predicated region fallthrough
CT: control target
= control target key end

     0   :  { %15 = vsyncpa [#allocation3], 0  ;;  %s3098_s0 = inlined_call_operand.hbm [shape: bf16[128,128], index: 0, kind: input, shape index: {}]   ;;  %s3099_s1 = inlined_call_operand.vmem [shape: f32[128,32], index: 1, kind: input, shape index: {}]   ;;  %s3100_s2 = inlined_call_operand.vmem [shape: f32[32,128], index: 2, kind: input, shape index: {}]   ;;  %s3101_s3 = inlined_call_operand.hbm [shape: f32[32,128], index: 3, kind: input, shape index: {}]   ;;  %s3102_s4 = inlined_call_operand.vmem [shape: f32[128,128], index: 4, kind: input, shape index: {}]   ;;  %s3103_s5 = inlined_call_operand.hbm [shape: f32[128,128], index: 5, kind: input, shape index: {}]   ;;  %s3104_s6 = inlined_call_operand.hbm [shape: f32[128,128], index: 6, kind: input, shape index: {}]   ;;  %s3105_s7 = inlined_call_operand.hbm [shape: f32[128,128], index: 7, kind: input, shape index: {}]   ;;  %s3106_s8 = inlined_call_operand.hbm [shape: f32[128,128], index: 8, kind: output, shape index: {0}]   ;;  %s3107_s9 = inlined_call_operand.hbm [shape: f32[128,128], index: 9, kind: output, shape index: {1}]  }
   0x1   :  { %16 = vsyncpa [#allocation6], 0 }
   0x2   :  { %17 = vsyncpa [#allocation9], 0 }
   0x3   :  { %18 = vsyncpa [#allocation4], 0 }
   0x4   :  { %19 = vsyncpa [#allocation13], 0  ;;  %s2383_s30 = smov [#allocation5]   ;;  %s2219_s13 = scalar_lea.hbm %s3101_s3, 512 }
   0x5   :  { %s41_s10 = sshll.u32 %s2383_s30, 4  ;;  %p2220_p0 = scmp.ne.s32.totalorder %s3101_s3, %s2219_s13  ;;  %s42_s10 = int_to_ptr.vmem [resolvable:$true] %s41_s10 }
   0x6   :  { %p2223_p1 = scmp.lt.u32.totalorder %s2219_s13, %s3101_s3 }
   0x8   :  { %p2225_p2 = pnand %p2223_p1, %p2220_p0 }
   0xa   :  { %2228 = shalt.err (!%p2225_p2)
}
   0xb   :  { %s2229_s18 = scalar_lea.vmem %s42_s10, 512  ;;  %p2234_p4 = scmp.lt.s32.totalorder %s42_s10, %s42_s10 }
   0xc   :  { %p2230_p3 = scmp.ne.s32.totalorder %s42_s10, %s2229_s18  ;;  %p2235_p5 = scmp.lt.s32.totalorder %s2229_s18, %s2229_s18 }
   0xe   :  { %p2236_p6 = por %p2235_p5, %p2234_p4 }
  0x10   :  { %p2237_p7 = pnand %p2236_p6, %p2230_p3 }
  0x12   :  { %2240 = shalt.err (!%p2237_p7)
}
  0x13   :  { %s2384_s19 = smov 128   ;;  %s2385_s20 = smov 8  }
  0x14   :  { %47 = dma.hbm_to_vmem [thread:$0]  %s3101_s3, 512, %s42_s10, [#allocation6], %s2384_s19, %s2384_s19, %s2385_s20  }
  0x15   :  { %s2386_s23 = smov [#allocation8]   ;;  %s2387_s25 = smov [#allocation2]  }
  0x16   :  { %s67_s24 = sshll.u32 %s2386_s23, 4  ;;  %s25_s26 = sshll.u32 %s2387_s25, 4  ;;  %s68_s24 = int_to_ptr.vmem [resolvable:$true] %s67_s24  ;;  %s26_s26 = int_to_ptr.vmem [resolvable:$true] %s25_s26 }
  0x17   :  { %s2241_s29 = scalar_lea.hbm %s3104_s6, 2048 }
  0x18   :  { %p2242_p8 = scmp.ne.s32.totalorder %s3104_s6, %s2241_s29  ;;  %p2245_p9 = scmp.lt.u32.totalorder %s2241_s29, %s3104_s6 }
  0x1a   :  { %p2247_p10 = pnand %p2245_p9, %p2242_p8 }
  0x1c   :  { %2250 = shalt.err (!%p2247_p10)
}
  0x1d   :  { %s2251_s3 = scalar_lea.vmem %s68_s24, 2048  ;;  %p2256_p12 = scmp.lt.s32.totalorder %s68_s24, %s68_s24 }
  0x1e   :  { %p2252_p11 = scmp.ne.s32.totalorder %s68_s24, %s2251_s3  ;;  %p2257_p13 = scmp.lt.s32.totalorder %s2251_s3, %s2251_s3 }
  0x20   :  { %p2258_p0 = por %p2257_p13, %p2256_p12 }
  0x22   :  { %p2259_p1 = pnand %p2258_p0, %p2252_p11 }
  0x24   :  { %2262 = shalt.err (!%p2259_p1)
}
  0x25   :  { %73 = dma.hbm_to_vmem [thread:$0]  %s3104_s6, 2048, %s68_s24, [#allocation9], %s2384_s19, %s2384_s19, %s2385_s20  }
  0x26   :  { %s2263_s17 = scalar_lea.hbm %s3098_s0, 1024 }
  0x27   :  { %p2264_p2 = scmp.ne.s32.totalorder %s3098_s0, %s2263_s17  ;;  %p2267_p3 = scmp.lt.u32.totalorder %s2263_s17, %s3098_s0 }
  0x29   :  { %p2269_p4 = pnand %p2267_p3, %p2264_p2 }
  0x2b   :  { %2272 = shalt.err (!%p2269_p4)
}
  0x2c   :  { %s2273_s25 = scalar_lea.vmem %s26_s26, 1024  ;;  %p2278_p6 = scmp.lt.s32.totalorder %s26_s26, %s26_s26 }
  0x2d   :  { %p2274_p5 = scmp.ne.s32.totalorder %s26_s26, %s2273_s25  ;;  %p2279_p7 = scmp.lt.s32.totalorder %s2273_s25, %s2273_s25 }
  0x2f   :  { %p2280_p8 = por %p2279_p7, %p2278_p6 }
  0x31   :  { %p2281_p9 = pnand %p2280_p8, %p2274_p5 }
  0x33   :  { %2284 = shalt.err (!%p2281_p9)
}
  0x34   :  { %s2388_s6 = smov 64   ;;  %s2389_s24 = smov 4  }
  0x35   :  { %31 = dma.hbm_to_vmem [thread:$0]  %s3098_s0, 1024, %s26_s26, [#allocation3], %s2388_s6, %s2388_s6, %s2389_s24  }
  0x36   :  { %s2390_s29 = smov [#allocation7]   ;;  %s2391_s11 = smov [#allocation10]  }
  0x37   :  { %s55_s30 = sshll.u32 %s2390_s29, 4  ;;  %s79_s12 = sshll.u32 %s2391_s11, 4  ;;  %s56_s30 = int_to_ptr.vmem [resolvable:$true] %s55_s30  ;;  %s80_s12 = int_to_ptr.vmem [resolvable:$true] %s79_s12 }
  0x38   :  { %s2285_s10 = scalar_lea.hbm %s3103_s5, 2048 }
  0x39   :  { %p2286_p10 = scmp.ne.s32.totalorder %s3103_s5, %s2285_s10  ;;  %p2289_p11 = scmp.lt.u32.totalorder %s2285_s10, %s3103_s5 }
  0x3b   :  { %p2291_p12 = pnand %p2289_p11, %p2286_p10 }
  0x3d   :  { %2294 = shalt.err (!%p2291_p12)
}
  0x3e   :  { %s2295_s0 = scalar_lea.vmem %s56_s30, 2048  ;;  %p2300_p0 = scmp.lt.s32.totalorder %s56_s30, %s56_s30 }
  0x3f   :  { %p2296_p13 = scmp.ne.s32.totalorder %s56_s30, %s2295_s0  ;;  %p2301_p1 = scmp.lt.s32.totalorder %s2295_s0, %s2295_s0 }
  0x41   :  { %p2302_p2 = por %p2301_p1, %p2300_p0 }
  0x43   :  { %p2303_p3 = pnand %p2302_p2, %p2296_p13 }
  0x45   :  { %2306 = shalt.err (!%p2303_p3)
}
  0x46   :  { %61 = dma.hbm_to_vmem [thread:$0]  %s3103_s5, 2048, %s56_s30, [#allocation6], %s2384_s19, %s2384_s19, %s2385_s20  }
  0x47   :  { %s2307_s23 = scalar_lea.hbm %s3105_s7, 2048 }
  0x48   :  { %p2308_p4 = scmp.ne.s32.totalorder %s3105_s7, %s2307_s23  ;;  %p2311_p5 = scmp.lt.u32.totalorder %s2307_s23, %s3105_s7 }
  0x4a   :  { %p2313_p6 = pnand %p2311_p5, %p2308_p4 }
  0x4c   :  { %2316 = shalt.err (!%p2313_p6)
}
  0x4d   :  { %s2317_s28 = scalar_lea.vmem %s80_s12, 2048  ;;  %p2322_p8 = scmp.lt.s32.totalorder %s80_s12, %s80_s12 }
  0x4e   :  { %p2318_p7 = scmp.ne.s32.totalorder %s80_s12, %s2317_s28  ;;  %p2323_p9 = scmp.lt.s32.totalorder %s2317_s28, %s2317_s28 }
  0x50   :  { %p2324_p10 = por %p2323_p9, %p2322_p8 }
  0x52   :  { %p2325_p11 = pnand %p2324_p10, %p2318_p7 }
  0x54   :  { %2328 = shalt.err (!%p2325_p11)
}
  0x55   :  { %85 = dma.hbm_to_vmem [thread:$0]  %s3105_s7, 2048, %s80_s12, [#allocation9], %s2384_s19, %s2384_s19, %s2385_s20  }
  0x56   :  { %2373 = dma.done.wait [#allocation3], 1024  }
  0x57   :  { %2374 = vsyncadd [#allocation3], 4294966272 }
  0x58   :  { %2375 = dma.done.wait [#allocation6], 2560  }
  0x59   :  { %2376 = vsyncadd [#allocation6], 4294964736 }
  0x5a   :  { %2377 = dma.done.wait [#allocation9], 4096  }
  0x5b   :  { %2378 = vsyncadd [#allocation9], 4294963200  ;;  %v2519_v0 = vld [vmem:[%s3099_s1] sm:$0xff]  ;;  %v2524_v1 = vld [vmem:[%s3099_s1 + $0x8] sm:$0xff]  ;;  %vm343_vm0 = vcmask 261120  }
  0x5c   :  { %v2529_v2 = vld [vmem:[%s3099_s1 + $0x10] sm:$0xff]  ;;  %v158_v3 = vpack.c.bf16 %v2524_v1, %v2519_v0  ;;  %v2536_v4 = vld [vmem:[%s3099_s1 + $0x18] sm:$0xff]  ;;  %v2543_v6 = vld [vmem:[%s3099_s1 + $0x20] sm:$0xff] }
  0x5d   :  { %v159_v5 = vpack.c.bf16 %v2536_v4, %v2529_v2  ;;  %v2548_v7 = vld [vmem:[%s3099_s1 + $0x28] sm:$0xff]  ;;  %v2553_v8 = vld [vmem:[%s3099_s1 + $0x30] sm:$0xff]  ;;  %v2560_v10 = vld [vmem:[%s3099_s1 + $0x38] sm:$0xff] }
  0x5e   :  { %1768 = vmatprep.subr.bf16.mxu0 %v158_v3  ;;  %v160_v9 = vpack.c.bf16 %v2548_v7, %v2543_v6  ;;  %v2147_v11 = vld [vmem:[#allocation2] sm:$0xff]   ;;  %v161_v12 = vpack.c.bf16 %v2560_v10, %v2553_v8  ;;  %v2572_v14 = vld [vmem:[%s3099_s1 + $0x48] sm:$0xff]  ;;  %v2579_v18 = vld [vmem:[%s3099_s1 + $0x50] sm:$0xff] }
  0x5f   :  { %1769 = vmatpush3.bf16.msra.mxu0 %v158_v3  ;;  %1784 = vmatprep.mubr.bf16.mxu0 %v2147_v11  ;;  %v2567_v13 = vld [vmem:[%s3099_s1 + $0x40] sm:$0xff]  ;;  %v139_v17 = vld [vmem:[#allocation5 + $0x8] sm:$0xff]  ;;  %v2584_v19 = vld [vmem:[%s3099_s1 + $0x58] sm:$0xff] }
  0x60   :  { %1770 = vmatprep.subr.bf16.mxu0 %v159_v5  ;;  %v162_v15 = vpack.c.bf16 %v2572_v14, %v2567_v13  ;;  %v138_v16 = vld [vmem:[#allocation5] sm:$0xff]  ;;  %v163_v21 = vpack.c.bf16 %v2584_v19, %v2579_v18  ;;  %v2596_v23 = vld [vmem:[%s3099_s1 + $0x68] sm:$0xff]  ;;  %v2603_v25 = vld [vmem:[%s3099_s1 + $0x70] sm:$0xff] }
  0x61   :  { %v2008_v20 = vpack.c.bf16 %v139_v17, %v138_v16  ;;  %v2591_v22 = vld [vmem:[%s3099_s1 + $0x60] sm:$0xff]  ;;  %v2608_v26 = vld [vmem:[%s3099_s1 + $0x78] sm:$0xff]  ;;  %v2612_v28 = vld [vmem:[#allocation2 + $0x8] sm:$0xff]  }
  0x62   :  { %v164_v24 = vpack.c.bf16 %v2596_v23, %v2591_v22  ;;  %v165_v27 = vpack.c.bf16 %v2608_v26, %v2603_v25  ;;  %v2614_v29 = vld [vmem:[#allocation2 + $0x10] sm:$0xff]   ;;  %v2618_v30 = vld [vmem:[#allocation2 + $0x18] sm:$0xff]   ;;  %v2620_v31 = vld [vmem:[#allocation2 + $0x20] sm:$0xff]  }
  0x63   :  { %1771 = vmatpush3.bf16.msra.mxu0 %v159_v5  ;;  %2009 = vmatprep.subr.bf16.mxu1 %v2008_v20  ;;  %v2624_v32 = vld [vmem:[#allocation2 + $0x28] sm:$0xff]   ;;  %v2626_v33 = vld [vmem:[#allocation2 + $0x30] sm:$0xff]   ;;  %v2630_v34 = vld [vmem:[#allocation2 + $0x38] sm:$0xff]  }
  0x64   :  { %1772 = vmatprep.subr.bf16.mxu0 %v160_v9  ;;  %2011 = vmatpush3.bf16.msra.mxu1 %v2008_v20  ;;  %v140_v35 = vld [vmem:[#allocation5 + $0x10] sm:$0xff]  ;;  %v141_v36 = vld [vmem:[#allocation5 + $0x18] sm:$0xff]  ;;  %v134_v38 = vld [vmem:[%s3100_s2] sm:$0xff] }
  0x65   :  { %v2012_v37 = vpack.c.bf16 %v141_v36, %v140_v35  ;;  %v135_v39 = vld [vmem:[%s3100_s2 + $0x8] sm:$0xff]  ;;  %v136_v43 = vld [vmem:[%s3100_s2 + $0x10] sm:$0xff]  ;;  %v137_v44 = vld [vmem:[%s3100_s2 + $0x18] sm:$0xff] }
  0x66   :  { %v2016_v40 = vpack.c.bf16 %v135_v39, %v134_v38  ;;  %v2020_v49 = vpack.c.bf16 %v137_v44, %v136_v43 }
  0x67   :  { %1773 = vmatpush3.bf16.msra.mxu0 %v160_v9  ;;  %2013 = vmatprep.subr.bf16.mxu1 %v2012_v37 }
  0x68   :  { %1774 = vmatprep.subr.bf16.mxu0 %v161_v12  ;;  %2015 = vmatpush3.bf16.msra.mxu1 %v2012_v37 }
  0x69   :  { %2017 = vmatprep.subr.bf16.mxu1 %v2016_v40 }
  0x6b   :  { %1775 = vmatpush3.bf16.msra.mxu0 %v161_v12 }
  0x6c   :  { %1776 = vmatprep.subr.bf16.mxu0 %v162_v15 }
  0x6f   :  { %1777 = vmatpush3.bf16.msra.mxu0 %v162_v15 }
  0x70   :  { %1778 = vmatprep.subr.bf16.mxu0 %v163_v21 }
  0x73   :  { %1779 = vmatpush3.bf16.msra.mxu0 %v163_v21 }
  0x74   :  { %1780 = vmatprep.subr.bf16.mxu0 %v164_v24 }
  0x77   :  { %1781 = vmatpush3.bf16.msra.mxu0 %v164_v24 }
  0x78   :  { %1782 = vmatprep.subr.bf16.mxu0 %v165_v27 }
  0x7b   :  { %1783 = vmatpush3.bf16.msra.mxu0 %v165_v27 }
  0x7e   :  { %1785 = vmatmul.mubr.bf16.vlgmr.msra.gmra.mrb[0].mxu0 %v2612_v28 }
  0x7f   :  { %1788 = vmatprep.mubr.bf16.mxu0 %v2614_v29 }
  0x86   :  { %1789 = vmatmul.mubr.bf16.gmra.mrb[4].mxu0 %v2618_v30 }
  0x87   :  { %1792 = vmatprep.mubr.bf16.mxu0 %v2620_v31 }
  0x8e   :  { %1793 = vmatmul.mubr.bf16.gmra.mrb[8].mxu0 %v2624_v32 }
  0x8f   :  { %1796 = vmatprep.mubr.bf16.mxu0 %v2626_v33 }
  0x96   :  { %1797 = vmatmul.mubr.bf16.gmra.mrb[12].mxu0 %v2630_v34 }
  0x97   :  { %1880 = vmatprep.mubr.bf16.mxu0 %v2147_v11 }
 0x151   :  { %v1786_v41 = vpop.f32.mrb[0].mxu0 }
 0x152   :  { %v248_v42 = vpop.f32.mrb[1].mxu0  ;;  %v329_v50 = vmul.f32 %v1786_v41, %v2529_v2  ;;  %v313_v37 = vadd.f32 %v1786_v41, %v2529_v2 }
 0x153   :  { %v1787_v45 = vpop.f32.mrb[2].mxu0  ;;  %v327_v46 = vmul.f32 %v248_v42, %v2519_v0  ;;  %v311_v35 = vadd.f32 %v248_v42, %v2519_v0  ;;  %v145_v42 = vld [vmem:[%s3102_s4 + $0x18] sm:$0xff] }
 0x154   :  { %v251_v47 = vpop.f32.mrb[3].mxu0  ;;  %v330_v51 = vmul.f32 %v1787_v45, %v2536_v4  ;;  %v314_v38 = vadd.f32 %v1787_v45, %v2536_v4 }
 0x155   :  { %v328_v48 = vmul.f32 %v251_v47, %v2524_v1  ;;  %1808 = vmatprep.mubr.msk.f32.mxu1 %vm343_vm0, %v327_v46  ;;  %v312_v36 = vadd.f32 %v251_v47, %v2524_v1 }
 0x157   :  { %1809 = vmatmul.mubr.msk.f32.vlgmr.msra.gmra.mrb[0].mxu1 %vm343_vm0, %v328_v48 }
 0x158   :  { %1811 = vmatprep.mubr.msk.f32.mxu1 %vm343_vm0, %v329_v50  ;;  %2019 = vmatpush3.bf16.msra.mxu1 %v2016_v40 }
 0x159   :  { %v1790_v52 = vpop.f32.mrb[4].mxu0  ;;  %2021 = vmatprep.subr.bf16.mxu1 %v2020_v49 }
 0x15a   :  { %v264_v53 = vpop.f32.mrb[5].mxu0  ;;  %v333_v58 = vmul.f32 %v1790_v52, %v2553_v8  ;;  %v317_v40 = vadd.f32 %v1790_v52, %v2553_v8 }
 0x15b   :  { %v331_v54 = vmul.f32 %v264_v53, %v2543_v6  ;;  %v1791_v55 = vpop.f32.mrb[6].mxu0  ;;  %1812 = vmatmul.mubr.msk.f32.gmra.mrb[2].mxu1 %vm343_vm0, %v330_v51  ;;  %v315_v39 = vadd.f32 %v264_v53, %v2543_v6  ;;  %v146_v53 = vld [vmem:[%s3102_s4 + $0x20] sm:$0xff] }
 0x15c   :  { %v267_v56 = vpop.f32.mrb[7].mxu0  ;;  %2023 = vmatpush3.bf16.msra.mxu1 %v2020_v49  ;;  %v334_v59 = vmul.f32 %v1791_v55, %v2560_v10  ;;  %v318_v1 = vadd.f32 %v1791_v55, %v2560_v10  ;;  %v147_v49 = vld [vmem:[%s3102_s4 + $0x28] sm:$0xff] }
 0x15d   :  { %v332_v57 = vmul.f32 %v267_v56, %v2548_v7  ;;  %1814 = vmatprep.mubr.msk.f32.mxu1 %vm343_vm0, %v331_v54  ;;  %v316_v0 = vadd.f32 %v267_v56, %v2548_v7 }
 0x15f   :  { %1815 = vmatmul.mubr.msk.f32.gmra.mrb[4].mxu1 %vm343_vm0, %v332_v57 }
 0x160   :  { %1817 = vmatprep.mubr.msk.f32.mxu1 %vm343_vm0, %v333_v58 }
 0x161   :  { %v1794_v60 = vpop.f32.mrb[8].mxu0 }
 0x162   :  { %v280_v61 = vpop.f32.mrb[9].mxu0  ;;  %v337_v9 = vmul.f32 %v1794_v60, %v2579_v18  ;;  %v321_v6 = vadd.f32 %v1794_v60, %v2579_v18  ;;  %v143_v18 = vld [vmem:[%s3102_s4 + $0x8] sm:$0xff] }
 0x163   :  { %v335_v62 = vmul.f32 %v280_v61, %v2567_v13  ;;  %v1795_v63 = vpop.f32.mrb[10].mxu0  ;;  %1818 = vmatmul.mubr.msk.f32.gmra.mrb[6].mxu1 %vm343_vm0, %v334_v59  ;;  %v319_v2 = vadd.f32 %v280_v61, %v2567_v13 }
 0x164   :  { %v283_v3 = vpop.f32.mrb[11].mxu0  ;;  %v338_v11 = vmul.f32 %v1795_v63, %v2584_v19  ;;  %v322_v7 = vadd.f32 %v1795_v63, %v2584_v19  ;;  %v142_v19 = vld [vmem:[%s3102_s4] sm:$0xff] }
 0x165   :  { %v336_v5 = vmul.f32 %v283_v3, %v2572_v14  ;;  %1820 = vmatprep.mubr.msk.f32.mxu1 %vm343_vm0, %v335_v62  ;;  %v320_v4 = vadd.f32 %v283_v3, %v2572_v14  ;;  %v149_v62 = vld [vmem:[%s3102_s4 + $0x38] sm:$0xff] }
 0x167   :  { %1821 = vmatmul.mubr.msk.f32.gmra.mrb[8].mxu1 %vm343_vm0, %v336_v5  ;;  %v148_v5 = vld [vmem:[%s3102_s4 + $0x30] sm:$0xff] }
 0x168   :  { %1823 = vmatprep.mubr.msk.f32.mxu1 %vm343_vm0, %v337_v9 }
 0x169   :  { %v1798_v12 = vpop.f32.mrb[12].mxu0 }
 0x16a   :  { %v296_v15 = vpop.f32.mrb[13].mxu0  ;;  %v341_v24 = vmul.f32 %v1798_v12, %v2603_v25  ;;  %v325_v13 = vadd.f32 %v1798_v12, %v2603_v25 }
 0x16b   :  { %v339_v16 = vmul.f32 %v296_v15, %v2591_v22  ;;  %v1799_v17 = vpop.f32.mrb[14].mxu0  ;;  %1824 = vmatmul.mubr.msk.f32.gmra.mrb[10].mxu1 %vm343_vm0, %v338_v11  ;;  %v323_v8 = vadd.f32 %v296_v15, %v2591_v22 }
 0x16c   :  { %v299_v20 = vpop.f32.mrb[15].mxu0  ;;  %v342_v27 = vmul.f32 %v1799_v17, %v2608_v26  ;;  %v326_v14 = vadd.f32 %v1799_v17, %v2608_v26  ;;  %v144_v26 = vld [vmem:[%s3102_s4 + $0x10] sm:$0xff] }
 0x16d   :  { %v340_v21 = vmul.f32 %v299_v20, %v2596_v23  ;;  %1826 = vmatprep.mubr.msk.f32.mxu1 %vm343_vm0, %v339_v16  ;;  %v324_v10 = vadd.f32 %v299_v20, %v2596_v23 }
 0x16f   :  { %1827 = vmatmul.mubr.msk.f32.gmra.mrb[12].mxu1 %vm343_vm0, %v340_v21  ;;  %v151_v21 = vld [vmem:[%s3102_s4 + $0x48] sm:$0xff] }
 0x170   :  { %1829 = vmatprep.mubr.msk.f32.mxu1 %vm343_vm0, %v341_v24 }
 0x173   :  { %1830 = vmatmul.mubr.msk.f32.gmra.mrb[14].mxu1 %vm343_vm0, %v342_v27 }
 0x174   :  { %1840 = vmatprep.mubr.msk.f32.mxu1 %vm343_vm0, %v311_v35 }
 0x177   :  { %1841 = vmatmul.mubr.msk.f32.vlgmr.msra.gmra.mrb[0].mxu1 %vm343_vm0, %v312_v36  ;;  %v150_v36 = vld [vmem:[%s3102_s4 + $0x40] sm:$0xff] }
 0x178   :  { %1843 = vmatprep.mubr.msk.f32.mxu1 %vm343_vm0, %v313_v37 }
 0x17b   :  { %1844 = vmatmul.mubr.msk.f32.gmra.mrb[2].mxu1 %vm343_vm0, %v314_v38 }
 0x17c   :  { %1846 = vmatprep.mubr.msk.f32.mxu1 %vm343_vm0, %v315_v39 }
 0x17f   :  { %1847 = vmatmul.mubr.msk.f32.gmra.mrb[4].mxu1 %vm343_vm0, %v316_v0 }
 0x180   :  { %1849 = vmatprep.mubr.msk.f32.mxu1 %vm343_vm0, %v317_v40 }
 0x183   :  { %1850 = vmatmul.mubr.msk.f32.gmra.mrb[6].mxu1 %vm343_vm0, %v318_v1 }
 0x184   :  { %1852 = vmatprep.mubr.msk.f32.mxu1 %vm343_vm0, %v319_v2 }
 0x187   :  { %1853 = vmatmul.mubr.msk.f32.gmra.mrb[8].mxu1 %vm343_vm0, %v320_v4  ;;  %v153_v4 = vld [vmem:[%s3102_s4 + $0x58] sm:$0xff] }
 0x188   :  { %1855 = vmatprep.mubr.msk.f32.mxu1 %vm343_vm0, %v321_v6 }
 0x18b   :  { %1856 = vmatmul.mubr.msk.f32.gmra.mrb[10].mxu1 %vm343_vm0, %v322_v7 }
 0x18c   :  { %1858 = vmatprep.mubr.msk.f32.mxu1 %vm343_vm0, %v323_v8 }
 0x18f   :  { %1859 = vmatmul.mubr.msk.f32.gmra.mrb[12].mxu1 %vm343_vm0, %v324_v10  ;;  %v152_v10 = vld [vmem:[%s3102_s4 + $0x50] sm:$0xff] }
 0x190   :  { %1861 = vmatprep.mubr.msk.f32.mxu1 %vm343_vm0, %v325_v13 }
 0x193   :  { %1862 = vmatmul.mubr.msk.f32.gmra.mrb[14].mxu1 %vm343_vm0, %v326_v14 }
 0x24a   :  { %v1842_v22 = vpop.f32.mrb[0].mxu1 }
 0x24b   :  { %v731_v23 = vadd.f32 %v1842_v22, %v143_v18  ;;  %v651_v41 = vpop.f32.mrb[1].mxu1 }
 0x24c   :  { %v730_v25 = vadd.f32 %v651_v41, %v142_v19 }
 0x24d   :  { %v763_v43 = vmul.f32 0.2, %v731_v23  ;;  %vm747_vm2 = vcmp.gt.f32.partialorder %v731_v23, 0.0 }
 0x24e   :  { %v762_v44 = vmul.f32 0.2, %v730_v25  ;;  %v1845_v45 = vpop.f32.mrb[2].mxu1  ;;  %vm746_vm1 = vcmp.gt.f32.partialorder %v730_v25, 0.0 }
 0x24f   :  { %v733_v46 = vadd.f32 %v1845_v45, %v145_v42  ;;  %v661_v47 = vpop.f32.mrb[3].mxu1  ;;  %v2731_v56 = vsel %vm747_vm2, %v731_v23, %v763_v43 }
 0x250   :  { %v732_v48 = vadd.f32 %v661_v47, %v144_v26  ;;  %v2724_v50 = vsel %vm746_vm1, %v730_v25, %v762_v44  ;;  %v795_v3 = vmul.f32 %v2731_v56, %v2731_v56  ;;  %v155_v25 = vld [vmem:[%s3102_s4 + $0x68] sm:$0xff]  ;;  %v154_v44 = vld [vmem:[%s3102_s4 + $0x60] sm:$0xff] }
 0x251   :  { %v765_v51 = vmul.f32 0.2, %v733_v46  ;;  %v794_v52 = vmul.f32 %v2724_v50, %v2724_v50  ;;  %vm749_vm3 = vcmp.gt.f32.partialorder %v733_v46, 0.0 }
 0x252   :  { %v764_v54 = vmul.f32 0.2, %v732_v48  ;;  %v1848_v55 = vpop.f32.mrb[4].mxu1  ;;  %vm748_vm4 = vcmp.gt.f32.partialorder %v732_v48, 0.0 }
 0x253   :  { %v735_v57 = vadd.f32 %v1848_v55, %v147_v49  ;;  %810 = vadd.xlane.f32.xlu0 %v794_v52  ;;  %v671_v58 = vpop.f32.mrb[5].mxu1  ;;  %v2733_v59 = vsel %vm749_vm3, %v733_v46, %v765_v51 }
 0x254   :  { %v734_v60 = vadd.f32 %v671_v58, %v146_v53  ;;  %v797_v61 = vmul.f32 %v2733_v59, %v2733_v59  ;;  %v2745_v9 = vsel %vm748_vm4, %v732_v48, %v764_v54  ;;  %v157_v53 = vld [vmem:[%s3102_s4 + $0x78] sm:$0xff]  ;;  %v156_v58 = vld [vmem:[%s3102_s4 + $0x70] sm:$0xff]  ;;  %s2392_s4 = smov [#allocation11]  }
 0x255   :  { %v767_v63 = vmul.f32 0.2, %v735_v57  ;;  %vm751_vm6 = vcmp.gt.f32.partialorder %v735_v57, 0.0  ;;  %v796_v20 = vmul.f32 %v2745_v9, %v2745_v9  ;;  %s1562_s27 = sshll.u32 %s2392_s4, 4  ;;  %s1563_s27 = int_to_ptr.vmem [resolvable:$true] %s1562_s27 }
 0x256   :  { %v766_v11 = vmul.f32 0.2, %v734_v60  ;;  %816 = vadd.xlane.f32.xlu1 %v797_v61  ;;  %v1851_v12 = vpop.f32.mrb[6].mxu1  ;;  %vm750_vm5 = vcmp.gt.f32.partialorder %v734_v60, 0.0  ;;  %s2329_s28 = scalar_lea.vmem %s1563_s27, 2048  ;;  %p2334_p13 = scmp.lt.s32.totalorder %s1563_s27, %s1563_s27 }
 0x257   :  { %v737_v15 = vadd.f32 %v1851_v12, %v149_v62  ;;  %812 = vadd.xlane.f32.xlu0 %v795_v3  ;;  %v681_v16 = vpop.f32.mrb[7].mxu1  ;;  %v2759_v37 = vsel %vm751_vm6, %v735_v57, %v767_v63  ;;  %p2330_p12 = scmp.ne.s32.totalorder %s1563_s27, %s2329_s28  ;;  %p2335_p0 = scmp.lt.s32.totalorder %s2329_s28, %s2329_s28 }
 0x258   :  { %v736_v17 = vadd.f32 %v681_v16, %v148_v5  ;;  %v2752_v24 = vsel %vm750_vm5, %v734_v60, %v766_v11  ;;  %v799_v2 = vmul.f32 %v2759_v37, %v2759_v37 }
 0x259   :  { %v769_v27 = vmul.f32 0.2, %v737_v15  ;;  %v798_v35 = vmul.f32 %v2752_v24, %v2752_v24  ;;  %vm753_vm8 = vcmp.gt.f32.partialorder %v737_v15, 0.0  ;;  %p2336_p1 = por %p2335_p0, %p2334_p13 }
 0x25a   :  { %v768_v38 = vmul.f32 0.2, %v736_v17  ;;  %814 = vadd.xlane.f32.xlu1 %v796_v20  ;;  %v1854_v39 = vpop.f32.mrb[8].mxu1  ;;  %vm752_vm7 = vcmp.gt.f32.partialorder %v736_v17, 0.0 }
 0x25b   :  { %v739_v0 = vadd.f32 %v1854_v39, %v151_v21  ;;  %818 = vadd.xlane.f32.xlu0 %v798_v35  ;;  %v691_v40 = vpop.f32.mrb[9].mxu1  ;;  %v2773_v13 = vsel %vm753_vm8, %v737_v15, %v769_v27  ;;  %v922_v39 = vld [vmem:[#allocation8] sm:$0xff]  ;;  %p2337_p2 = pnand %p2336_p1, %p2330_p12 }
 0x25c   :  { %v738_v1 = vadd.f32 %v691_v40, %v150_v36  ;;  %v2766_v6 = vsel %vm752_vm7, %v736_v17, %v768_v38  ;;  %v801_v41 = vmul.f32 %v2773_v13, %v2773_v13 }
 0x25d   :  { %v771_v7 = vmul.f32 0.2, %v739_v0  ;;  %v800_v8 = vmul.f32 %v2766_v6, %v2766_v6  ;;  %vm755_vm10 = vcmp.gt.f32.partialorder %v739_v0, 0.0 }
 0x25e   :  { %v770_v14 = vmul.f32 0.2, %v738_v1  ;;  %820 = vadd.xlane.f32.xlu1 %v799_v2  ;;  %v1857_v18 = vpop.f32.mrb[10].mxu1  ;;  %vm754_vm9 = vcmp.gt.f32.partialorder %v738_v1, 0.0  ;;  %v925_v2 = vld [vmem:[#allocation8 + $0x18] sm:$0xff] }
 0x25f   :  { %v741_v19 = vadd.f32 %v1857_v18, %v153_v4  ;;  %822 = vadd.xlane.f32.xlu0 %v800_v8  ;;  %v701_v22 = vpop.f32.mrb[11].mxu1  ;;  %v2787_v45 = vsel %vm755_vm10, %v739_v0, %v771_v7  ;;  %v923_v0 = vld [vmem:[#allocation8 + $0x8] sm:$0xff]  ;;  %v926_v7 = vld [vmem:[#allocation8 + $0x20] sm:$0xff]  ;;  %v929_v18 = vld [vmem:[#allocation8 + $0x38] sm:$0xff] }
 0x260   :  { %v740_v23 = vadd.f32 %v701_v22, %v152_v10  ;;  %v2780_v42 = vsel %vm754_vm9, %v738_v1, %v770_v14  ;;  %v803_v52 = vmul.f32 %v2787_v45, %v2787_v45  ;;  %v2024_v40 = vpack.c.bf16 %v923_v0, %v922_v39  ;;  %v924_v1 = vld [vmem:[#allocation8 + $0x10] sm:$0xff]  ;;  %v927_v8 = vld [vmem:[#allocation8 + $0x28] sm:$0xff]  ;;  %v930_v22 = vld [vmem:[#allocation8 + $0x40] sm:$0xff] }
 0x261   :  { %v773_v26 = vmul.f32 0.2, %v741_v19  ;;  %v802_v43 = vmul.f32 %v2780_v42, %v2780_v42  ;;  %vm757_vm12 = vcmp.gt.f32.partialorder %v741_v19, 0.0  ;;  %v2028_v4 = vpack.c.bf16 %v925_v2, %v924_v1  ;;  %v928_v14 = vld [vmem:[#allocation8 + $0x30] sm:$0xff] }
 0x262   :  { %v772_v46 = vmul.f32 0.2, %v740_v23  ;;  %824 = vadd.xlane.f32.xlu1 %v801_v41  ;;  %v1860_v47 = vpop.f32.mrb[12].mxu1  ;;  %vm756_vm11 = vcmp.gt.f32.partialorder %v740_v23, 0.0  ;;  %2025 = vmatprep.subr.bf16.mxu1 %v2024_v40  ;;  %v2032_v10 = vpack.c.bf16 %v927_v8, %v926_v7 }
 0x263   :  { %v743_v48 = vadd.f32 %v1860_v47, %v155_v25  ;;  %826 = vadd.xlane.f32.xlu0 %v802_v43  ;;  %v711_v49 = vpop.f32.mrb[13].mxu1  ;;  %v2801_v60 = vsel %vm757_vm12, %v741_v19, %v773_v26  ;;  %2027 = vmatpush3.bf16.msra.mxu1 %v2024_v40  ;;  %v2036_v19 = vpack.c.bf16 %v929_v18, %v928_v14  ;;  %v932_v25 = vld [vmem:[#allocation8 + $0x50] sm:$0xff]  ;;  %v933_v26 = vld [vmem:[#allocation8 + $0x58] sm:$0xff] }
 0x264   :  { %v742_v51 = vadd.f32 %v711_v49, %v154_v44  ;;  %v2794_v54 = vsel %vm756_vm11, %v740_v23, %v772_v46  ;;  %v805_v11 = vmul.f32 %v2801_v60, %v2801_v60  ;;  %2029 = vmatprep.subr.bf16.mxu1 %v2028_v4  ;;  %v931_v23 = vld [vmem:[#allocation8 + $0x48] sm:$0xff]  ;;  %v2044_v43 = vpack.c.bf16 %v933_v26, %v932_v25  ;;  %v934_v44 = vld [vmem:[#allocation8 + $0x60] sm:$0xff] }
 0x265   :  { %v775_v55 = vmul.f32 0.2, %v743_v48  ;;  %v804_v57 = vmul.f32 %v2794_v54, %v2794_v54  ;;  %vm759_vm14 = vcmp.gt.f32.partialorder %v743_v48, 0.0  ;;  %v2040_v41 = vpack.c.bf16 %v931_v23, %v930_v22  ;;  %v935_v46 = vld [vmem:[#allocation8 + $0x68] sm:$0xff] }
 0x266   :  { %v774_v61 = vmul.f32 0.2, %v742_v51  ;;  %828 = vadd.xlane.f32.xlu1 %v803_v52  ;;  %v1863_v62 = vpop.f32.mrb[14].mxu1  ;;  %vm758_vm13 = vcmp.gt.f32.partialorder %v742_v51, 0.0  ;;  %v2048_v47 = vpack.c.bf16 %v935_v46, %v934_v44 }
 0x267   :  { %v745_v63 = vadd.f32 %v1863_v62, %v157_v53  ;;  %830 = vadd.xlane.f32.xlu0 %v804_v57  ;;  %v721_v3 = vpop.f32.mrb[15].mxu1  ;;  %v2809_v17 = vsel %vm759_vm14, %v743_v48, %v775_v55  ;;  %2031 = vmatpush3.bf16.msra.mxu1 %v2028_v4 }
 0x268   :  { %v744_v5 = vadd.f32 %v721_v3, %v156_v58  ;;  %v2805_v12 = vsel %vm758_vm13, %v742_v51, %v774_v61  ;;  %v807_v21 = vmul.f32 %v2809_v17, %v2809_v17  ;;  %2033 = vmatprep.subr.bf16.mxu1 %v2032_v10 }
 0x269   :  { %v777_v15 = vmul.f32 0.2, %v745_v63  ;;  %v806_v16 = vmul.f32 %v2805_v12, %v2805_v12  ;;  %vm761_vm0 = vcmp.gt.f32.partialorder %v745_v63, 0.0 }
 0x26a   :  { %v776_v20 = vmul.f32 0.2, %v744_v5  ;;  %832 = vadd.xlane.f32.xlu1 %v805_v11  ;;  %vm760_vm15 = vcmp.gt.f32.partialorder %v744_v5, 0.0 }
 0x26b   :  { %834 = vadd.xlane.f32.xlu0 %v806_v16  ;;  %v2817_v36 = vsel %vm761_vm0, %v745_v63, %v777_v15  ;;  %2035 = vmatpush3.bf16.msra.mxu1 %v2032_v10 }
 0x26c   :  { %v2813_v27 = vsel %vm760_vm15, %v744_v5, %v776_v20  ;;  %v809_v38 = vmul.f32 %v2817_v36, %v2817_v36  ;;  %2037 = vmatprep.subr.bf16.mxu1 %v2036_v19 }
 0x26d   :  { %v808_v35 = vmul.f32 %v2813_v27, %v2813_v27 }
 0x26e   :  { %836 = vadd.xlane.f32.xlu1 %v807_v21 }
 0x26f   :  { %838 = vadd.xlane.f32.xlu0 %v808_v35  ;;  %2039 = vmatpush3.bf16.msra.mxu1 %v2036_v19 }
 0x270   :  { %2041 = vmatprep.subr.bf16.mxu1 %v2040_v41 }
 0x272   :  { %840 = vadd.xlane.f32.xlu1 %v809_v38 }
 0x273   :  { %2043 = vmatpush3.bf16.msra.mxu1 %v2040_v41 }
 0x274   :  { %2045 = vmatprep.subr.bf16.mxu1 %v2044_v43 }
 0x277   :  { %2047 = vmatpush3.bf16.msra.mxu1 %v2044_v43 }
 0x278   :  { %2049 = vmatprep.subr.bf16.mxu1 %v2048_v47 }
 0x27b   :  { %2051 = vmatpush3.bf16.msra.mxu1 %v2048_v47 }
 0x2e0   :  { %v811_v48 = vpop.xlane.xlu0 %810 }
 0x2e1   :  { %v842_v49 = vmax.f32 %v811_v48, 1e-24 }
 0x2e3   :  { %2155 = vrsqrt.f32 %v842_v49  ;;  %v817_v51 = vpop.xlane.xlu1 %816 }
 0x2e4   :  { %v845_v52 = vmax.f32 %v817_v51, 1e-24  ;;  %v813_v53 = vpop.xlane.xlu0 %812 }
 0x2e5   :  { %v843_v55 = vmax.f32 %v813_v53, 1e-24 }
 0x2e6   :  { %2157 = vrsqrt.f32 %v845_v52 }
 0x2e7   :  { %2159 = vrsqrt.f32 %v843_v55  ;;  %v815_v57 = vpop.xlane.xlu1 %814 }
 0x2e8   :  { %v844_v58 = vmax.f32 %v815_v57, 1e-24  ;;  %v819_v61 = vpop.xlane.xlu0 %818 }
 0x2e9   :  { %v846_v62 = vmax.f32 %v819_v61, 1e-24 }
 0x2ea   :  { %2161 = vrsqrt.f32 %v844_v58 }
 0x2eb   :  { %2163 = vrsqrt.f32 %v846_v62  ;;  %v821_v63 = vpop.xlane.xlu1 %820 }
 0x2ec   :  { %v847_v3 = vmax.f32 %v821_v63, 1e-24  ;;  %v823_v5 = vpop.xlane.xlu0 %822 }
 0x2ed   :  { %v2156_v11 = vpop.eup %2155  ;;  %v848_v15 = vmax.f32 %v823_v5, 1e-24 }
 0x2ee   :  { %2165 = vrsqrt.f32 %v847_v3  ;;  %v2822_v16 = vmul.f32 %v2156_v11, %v2724_v50 }
 0x2ef   :  { %2167 = vrsqrt.f32 %v848_v15  ;;  %v825_v20 = vpop.xlane.xlu1 %824 }
 0x2f0   :  { %v2158_v21 = vpop.eup %2157  ;;  %v849_v35 = vmax.f32 %v825_v20, 1e-24  ;;  %v827_v38 = vpop.xlane.xlu0 %826  ;;  %890 = vst [vmem:[#allocation11] sm:$0xff] %v2822_v16 }
 0x2f1   :  { %v2160_v39 = vpop.eup %2159  ;;  %v850_v0 = vmax.f32 %v827_v38, 1e-24  ;;  %v2826_v40 = vmul.f32 %v2158_v21, %v2733_v59  ;;  %v907_v38 = vld [vmem:[#allocation7 + $0x8] sm:$0xff] }
 0x2f2   :  { %2169 = vrsqrt.f32 %v849_v35  ;;  %v2829_v1 = vmul.f32 %v2160_v39, %v2731_v56  ;;  %v906_v35 = vld [vmem:[#allocation7] sm:$0xff]  ;;  %v908_v39 = vld [vmem:[#allocation7 + $0x10] sm:$0xff] }
 0x2f3   :  { %2171 = vrsqrt.f32 %v850_v0  ;;  %v829_v2 = vpop.xlane.xlu1 %828  ;;  %893 = vst [vmem:[#allocation11 + $0x18] sm:$0xff] %v2826_v40  ;;  %v909_v0 = vld [vmem:[#allocation7 + $0x18] sm:$0xff] }
 0x2f4   :  { %v2162_v50 = vpop.eup %2161  ;;  %v851_v4 = vmax.f32 %v829_v2, 1e-24  ;;  %v831_v7 = vpop.xlane.xlu0 %830  ;;  %891 = vst [vmem:[#allocation11 + $0x8] sm:$0xff] %v2829_v1  ;;  %v954_v8 = vpack.c.bf16 %v2829_v1, %v2822_v16  ;;  %v2904_v2 = vpack.c.bf16 %v909_v0, %v908_v39 }
 0x2f5   :  { %v2164_v10 = vpop.eup %2163  ;;  %v852_v14 = vmax.f32 %v831_v7, 1e-24  ;;  %v2836_v59 = vmul.f32 %v2162_v50, %v2745_v9  ;;  %v911_v50 = vld [vmem:[#allocation7 + $0x28] sm:$0xff]  ;;  %v912_v7 = vld [vmem:[#allocation7 + $0x30] sm:$0xff] }
 0x2f6   :  { %2173 = vrsqrt.f32 %v851_v4  ;;  %1864 = vmatprep.subr.bf16.mxu0 %v954_v8  ;;  %v2839_v56 = vmul.f32 %v2164_v10, %v2752_v24 }
 0x2f7   :  { %2175 = vrsqrt.f32 %v852_v14  ;;  %1865 = vmatpush3.bf16.msra.mxu0 %v954_v8  ;;  %v833_v18 = vpop.xlane.xlu1 %832  ;;  %892 = vst [vmem:[#allocation11 + $0x10] sm:$0xff] %v2836_v59  ;;  %v955_v19 = vpack.c.bf16 %v2826_v40, %v2836_v59  ;;  %v913_v8 = vld [vmem:[#allocation7 + $0x38] sm:$0xff]  ;;  %v914_v14 = vld [vmem:[#allocation7 + $0x40] sm:$0xff] }
 0x2f8   :  { %v2166_v22 = vpop.eup %2165  ;;  %v853_v23 = vmax.f32 %v833_v18, 1e-24  ;;  %v835_v41 = vpop.xlane.xlu0 %834  ;;  %894 = vst [vmem:[#allocation11 + $0x20] sm:$0xff] %v2839_v56  ;;  %v2914_v10 = vpack.c.bf16 %v913_v8, %v912_v7  ;;  %v915_v18 = vld [vmem:[#allocation7 + $0x48] sm:$0xff] }
 0x2f9   :  { %v2168_v9 = vpop.eup %2167  ;;  %v854_v25 = vmax.f32 %v835_v41, 1e-24  ;;  %1866 = vmatprep.subr.bf16.mxu0 %v955_v19  ;;  %v2846_v26 = vmul.f32 %v2166_v22, %v2759_v37  ;;  %v919_v41 = vld [vmem:[#allocation7 + $0x68] sm:$0xff] }
 0x2fa   :  { %2177 = vrsqrt.f32 %v853_v23  ;;  %v2849_v24 = vmul.f32 %v2168_v9, %v2766_v6  ;;  %v918_v23 = vld [vmem:[#allocation7 + $0x60] sm:$0xff]  ;;  %v937_v9 = vld [vmem:[#allocation8 + $0x78] sm:$0xff] }
 0x2fb   :  { %2179 = vrsqrt.f32 %v854_v25  ;;  %1867 = vmatpush3.bf16.msra.mxu0 %v955_v19  ;;  %v837_v43 = vpop.xlane.xlu1 %836  ;;  %895 = vst [vmem:[#allocation11 + $0x28] sm:$0xff] %v2846_v26  ;;  %v956_v44 = vpack.c.bf16 %v2846_v26, %v2839_v56  ;;  %v917_v19 = vld [vmem:[#allocation7 + $0x58] sm:$0xff]  ;;  %v920_v25 = vld [vmem:[#allocation7 + $0x70] sm:$0xff] }
 0x2fc   :  { %v2170_v46 = vpop.eup %2169  ;;  %v855_v47 = vmax.f32 %v837_v43, 1e-24  ;;  %v839_v48 = vpop.xlane.xlu0 %838  ;;  %896 = vst [vmem:[#allocation11 + $0x30] sm:$0xff] %v2849_v24  ;;  %v921_v43 = vld [vmem:[#allocation7 + $0x78] sm:$0xff] }
 0x2fd   :  { %v2172_v49 = vpop.eup %2171  ;;  %v856_v37 = vmax.f32 %v839_v48, 1e-24  ;;  %1868 = vmatprep.subr.bf16.mxu0 %v956_v44  ;;  %v2856_v51 = vmul.f32 %v2170_v46, %v2773_v13 }
 0x2fe   :  { %2181 = vrsqrt.f32 %v855_v47  ;;  %v2859_v6 = vmul.f32 %v2172_v49, %v2780_v42 }
 0x2ff   :  { %2183 = vrsqrt.f32 %v856_v37  ;;  %1869 = vmatpush3.bf16.msra.mxu0 %v956_v44  ;;  %v841_v52 = vpop.xlane.xlu1 %840  ;;  %897 = vst [vmem:[#allocation11 + $0x38] sm:$0xff] %v2856_v51  ;;  %v957_v53 = vpack.c.bf16 %v2856_v51, %v2849_v24 }
 0x300   :  { %v2174_v55 = vpop.eup %2173  ;;  %v857_v57 = vmax.f32 %v841_v52, 1e-24  ;;  %898 = vst [vmem:[#allocation11 + $0x40] sm:$0xff] %v2859_v6 }
 0x301   :  { %v2176_v58 = vpop.eup %2175  ;;  %1870 = vmatprep.subr.bf16.mxu0 %v957_v53  ;;  %v2866_v13 = vmul.f32 %v2174_v55, %v2787_v45 }
 0x302   :  { %2185 = vrsqrt.f32 %v857_v57  ;;  %v2869_v42 = vmul.f32 %v2176_v58, %v2794_v54 }
 0x303   :  { %1871 = vmatpush3.bf16.msra.mxu0 %v957_v53  ;;  %899 = vst [vmem:[#allocation11 + $0x48] sm:$0xff] %v2866_v13  ;;  %v958_v61 = vpack.c.bf16 %v2866_v13, %v2859_v6 }
 0x304   :  { %v2178_v62 = vpop.eup %2177  ;;  %900 = vst [vmem:[#allocation11 + $0x50] sm:$0xff] %v2869_v42 }
 0x305   :  { %v2180_v63 = vpop.eup %2179  ;;  %1872 = vmatprep.subr.bf16.mxu0 %v958_v61  ;;  %v2876_v3 = vmul.f32 %v2178_v62, %v2801_v60 }
 0x306   :  { %v2879_v45 = vmul.f32 %v2180_v63, %v2805_v12 }
 0x307   :  { %1873 = vmatpush3.bf16.msra.mxu0 %v958_v61  ;;  %901 = vst [vmem:[#allocation11 + $0x58] sm:$0xff] %v2876_v3  ;;  %v959_v54 = vpack.c.bf16 %v2876_v3, %v2869_v42 }
 0x308   :  { %v2182_v5 = vpop.eup %2181  ;;  %902 = vst [vmem:[#allocation11 + $0x60] sm:$0xff] %v2879_v45 }
 0x309   :  { %v2184_v11 = vpop.eup %2183  ;;  %1874 = vmatprep.subr.bf16.mxu0 %v959_v54  ;;  %v2886_v15 = vmul.f32 %v2182_v5, %v2809_v17 }
 0x30a   :  { %v2889_v60 = vmul.f32 %v2184_v11, %v2813_v27  ;;  %v2901_v27 = vpack.c.bf16 %v907_v38, %v906_v35 }
 0x30b   :  { %1875 = vmatpush3.bf16.msra.mxu0 %v959_v54  ;;  %903 = vst [vmem:[#allocation11 + $0x68] sm:$0xff] %v2886_v15  ;;  %v960_v12 = vpack.c.bf16 %v2886_v15, %v2879_v45 }
 0x30c   :  { %v2186_v20 = vpop.eup %2185  ;;  %904 = vst [vmem:[#allocation11 + $0x70] sm:$0xff] %v2889_v60 }
 0x30d   :  { %1876 = vmatprep.subr.bf16.mxu0 %v960_v12  ;;  %v2896_v21 = vmul.f32 %v2186_v20, %v2817_v36  ;;  %v910_v36 = vld [vmem:[#allocation7 + $0x20] sm:$0xff] }
 0x30e   :  { %v2910_v4 = vpack.c.bf16 %v911_v50, %v910_v36 }
 0x30f   :  { %1877 = vmatpush3.bf16.msra.mxu0 %v960_v12  ;;  %905 = vst [vmem:[#allocation11 + $0x78] sm:$0xff] %v2896_v21  ;;  %v961_v17 = vpack.c.bf16 %v2896_v21, %v2889_v60 }
 0x311   :  { %1878 = vmatprep.subr.bf16.mxu0 %v961_v17 }
 0x313   :  { %1879 = vmatpush3.bf16.msra.mxu0 %v961_v17 }
 0x314   :  { %2057 = vmatprep.subr.bf16.mxu0 %v2901_v27 }
 0x316   :  { %1881 = vmatmul.mubr.bf16.vlgmr.msra.gmra.mrb[16].mxu0 %v2612_v28  ;;  %v2920_v28 = vpack.c.bf16 %v915_v18, %v914_v14 }
 0x317   :  { %1884 = vmatprep.mubr.bf16.mxu0 %v2614_v29  ;;  %2059 = vmatpush3.bf16.msra.mxu0 %v2901_v27  ;;  %v916_v29 = vld [vmem:[#allocation7 + $0x50] sm:$0xff] }
 0x318   :  { %2061 = vmatprep.subr.bf16.mxu0 %v2904_v2  ;;  %v2924_v22 = vpack.c.bf16 %v917_v19, %v916_v29 }
 0x31b   :  { %2063 = vmatpush3.bf16.msra.mxu0 %v2904_v2 }
 0x31c   :  { %2065 = vmatprep.subr.bf16.mxu0 %v2910_v4 }
 0x31e   :  { %1885 = vmatmul.mubr.bf16.gmra.mrb[20].mxu0 %v2618_v30  ;;  %v2930_v30 = vpack.c.bf16 %v919_v41, %v918_v23 }
 0x31f   :  { %1888 = vmatprep.mubr.bf16.mxu0 %v2620_v31  ;;  %2067 = vmatpush3.bf16.msra.mxu0 %v2910_v4  ;;  %v936_v31 = vld [vmem:[#allocation8 + $0x70] sm:$0xff] }
 0x320   :  { %2069 = vmatprep.subr.bf16.mxu0 %v2914_v10 }
 0x323   :  { %2071 = vmatpush3.bf16.msra.mxu0 %v2914_v10 }
 0x324   :  { %2073 = vmatprep.subr.bf16.mxu0 %v2920_v28 }
 0x326   :  { %1889 = vmatmul.mubr.bf16.gmra.mrb[24].mxu0 %v2624_v32  ;;  %v2052_v32 = vpack.c.bf16 %v937_v9, %v936_v31  ;;  %v938_v31 = vld [vmem:[#allocation10] sm:$0xff] }
 0x327   :  { %1892 = vmatprep.mubr.bf16.mxu0 %v2626_v33  ;;  %2075 = vmatpush3.bf16.msra.mxu0 %v2920_v28  ;;  %v2936_v33 = vpack.c.bf16 %v921_v43, %v920_v25  ;;  %v941_v43 = vld [vmem:[#allocation10 + $0x18] sm:$0xff] }
 0x328   :  { %2077 = vmatprep.subr.bf16.mxu0 %v2924_v22  ;;  %2053 = vmatprep.subr.bf16.mxu1 %v2052_v32 }
 0x329   :  { %2055 = vmatpush3.bf16.msra.mxu1 %v2052_v32 }
 0x32a   :  { %2088 = vmatprep.subr.bf16.mxu1 %v2901_v27 }
 0x32b   :  { %2079 = vmatpush3.bf16.msra.mxu0 %v2924_v22 }
 0x32c   :  { %2081 = vmatprep.subr.bf16.mxu0 %v2930_v30 }
 0x32e   :  { %1893 = vmatmul.mubr.bf16.gmra.mrb[28].mxu0 %v2630_v34 }
 0x32f   :  { %2083 = vmatpush3.bf16.msra.mxu0 %v2930_v30 }
 0x330   :  { %2085 = vmatprep.subr.bf16.mxu0 %v2936_v33 }
 0x333   :  { %2087 = vmatpush3.bf16.msra.mxu0 %v2936_v33 }
 0x3e9   :  { %v1882_v44 = vpop.f32.mrb[16].mxu0 }
 0x3ea   :  { %v996_v46 = vpop.f32.mrb[17].mxu0  ;;  %v1077_v53 = vmul.f32 %v1882_v44, %v2836_v59  ;;  %v1061_v55 = vadd.f32 %v1882_v44, %v2836_v59  ;;  %v940_v44 = vld [vmem:[#allocation10 + $0x10] sm:$0xff] }
 0x3eb   :  { %v1059_v34 = vadd.f32 %v996_v46, %v2822_v16  ;;  %v1075_v47 = vmul.f32 %v996_v46, %v2822_v16  ;;  %v1883_v48 = vpop.f32.mrb[18].mxu0 }
 0x3ec   :  { %v999_v49 = vpop.f32.mrb[19].mxu0  ;;  %v1062_v57 = vadd.f32 %v1883_v48, %v2826_v40  ;;  %v1078_v16 = vmul.f32 %v1883_v48, %v2826_v40 }
 0x3ed   :  { %v1060_v37 = vadd.f32 %v999_v49, %v2829_v1  ;;  %v1076_v52 = vmul.f32 %v999_v49, %v2829_v1  ;;  %1928 = vmatprep.mubr.f32.mxu1 %v1075_v47  ;;  %1984 = vmatprep.mubr.f32.mxu0 %v1059_v34 }
 0x3ef   :  { %1929 = vmatmul.mubr.f32.vlgmr.msra.gmra.mrb[16].mxu1 %v1076_v52  ;;  %1985 = vmatmul.mubr.f32.vlgmr.msra.gmra.mrb[32].mxu0 %v1060_v37 }
 0x3f0   :  { %1931 = vmatprep.mubr.f32.mxu1 %v1077_v53  ;;  %2096 = vmatpush3.bf16.msra.mxu1 %v2901_v27  ;;  %v943_v53 = vld [vmem:[#allocation10 + $0x28] sm:$0xff] }
 0x3f1   :  { %1987 = vmatprep.mubr.f32.mxu0 %v1061_v55  ;;  %v1886_v58 = vpop.f32.mrb[20].mxu0  ;;  %2089 = vmatprep.subr.bf16.mxu1 %v2904_v2 }
 0x3f2   :  { %v1012_v1 = vpop.f32.mrb[21].mxu0  ;;  %v1081_v40 = vmul.f32 %v1886_v58, %v2849_v24  ;;  %v1065_v11 = vadd.f32 %v1886_v58, %v2849_v24 }
 0x3f3   :  { %v1063_v61 = vadd.f32 %v1012_v1, %v2839_v56  ;;  %v1079_v62 = vmul.f32 %v1012_v1, %v2839_v56  ;;  %v1887_v63 = vpop.f32.mrb[22].mxu0  ;;  %1932 = vmatmul.mubr.f32.gmra.mrb[18].mxu1 %v1078_v16  ;;  %1988 = vmatmul.mubr.f32.gmra.mrb[34].mxu0 %v1062_v57 }
 0x3f4   :  { %v1015_v59 = vpop.f32.mrb[23].mxu0  ;;  %2097 = vmatpush3.bf16.msra.mxu1 %v2904_v2  ;;  %v1066_v56 = vadd.f32 %v1887_v63, %v2856_v51  ;;  %v1082_v12 = vmul.f32 %v1887_v63, %v2856_v51 }
 0x3f5   :  { %v1064_v54 = vadd.f32 %v1015_v59, %v2846_v26  ;;  %v1080_v5 = vmul.f32 %v1015_v59, %v2846_v26  ;;  %1934 = vmatprep.mubr.f32.mxu1 %v1079_v62  ;;  %1990 = vmatprep.mubr.f32.mxu0 %v1063_v61  ;;  %v942_v61 = vld [vmem:[#allocation10 + $0x20] sm:$0xff] }
 0x3f6   :  { %2090 = vmatprep.subr.bf16.mxu1 %v2910_v4 }
 0x3f7   :  { %1935 = vmatmul.mubr.f32.gmra.mrb[20].mxu1 %v1080_v5  ;;  %1991 = vmatmul.mubr.f32.gmra.mrb[36].mxu0 %v1064_v54 }
 0x3f8   :  { %1937 = vmatprep.mubr.f32.mxu1 %v1081_v40  ;;  %2098 = vmatpush3.bf16.msra.mxu1 %v2910_v4 }
 0x3f9   :  { %1993 = vmatprep.mubr.f32.mxu0 %v1065_v11  ;;  %v1890_v20 = vpop.f32.mrb[24].mxu0  ;;  %2091 = vmatprep.subr.bf16.mxu1 %v2914_v10 }
 0x3fa   :  { %v1028_v26 = vpop.f32.mrb[25].mxu0  ;;  %v1085_v51 = vmul.f32 %v1890_v20, %v2869_v42 }
 0x3fb   :  { %v1067_v35 = vadd.f32 %v1028_v26, %v2859_v6  ;;  %v1083_v38 = vmul.f32 %v1028_v26, %v2859_v6  ;;  %v1891_v17 = vpop.f32.mrb[26].mxu0  ;;  %1938 = vmatmul.mubr.f32.gmra.mrb[22].mxu1 %v1082_v12  ;;  %1994 = vmatmul.mubr.f32.gmra.mrb[38].mxu0 %v1066_v56 }
 0x3fc   :  { %v1031_v24 = vpop.f32.mrb[27].mxu0  ;;  %2099 = vmatpush3.bf16.msra.mxu1 %v2914_v10  ;;  %v1086_v6 = vmul.f32 %v1891_v17, %v2876_v3  ;;  %v1069_v10 = vadd.f32 %v1890_v20, %v2869_v42  ;;  %v1070_v14 = vadd.f32 %v1891_v17, %v2876_v3  ;;  %v945_v20 = vld [vmem:[#allocation10 + $0x38] sm:$0xff] }
 0x3fd   :  { %v1068_v27 = vadd.f32 %v1031_v24, %v2866_v13  ;;  %v1084_v39 = vmul.f32 %v1031_v24, %v2866_v13  ;;  %1940 = vmatprep.mubr.f32.mxu1 %v1083_v38  ;;  %1996 = vmatprep.mubr.f32.mxu0 %v1067_v35 }
 0x3fe   :  { %2092 = vmatprep.subr.bf16.mxu1 %v2920_v28 }
 0x3ff   :  { %1941 = vmatmul.mubr.f32.gmra.mrb[24].mxu1 %v1084_v39  ;;  %1997 = vmatmul.mubr.f32.gmra.mrb[40].mxu0 %v1068_v27  ;;  %v944_v27 = vld [vmem:[#allocation10 + $0x30] sm:$0xff] }
 0x400   :  { %1943 = vmatprep.mubr.f32.mxu1 %v1085_v51  ;;  %2100 = vmatpush3.bf16.msra.mxu1 %v2920_v28 }
 0x401   :  { %v1894_v0 = vpop.f32.mrb[28].mxu0  ;;  %2093 = vmatprep.subr.bf16.mxu1 %v2924_v22 }
 0x402   :  { %v1044_v2 = vpop.f32.mrb[29].mxu0  ;;  %v1089_v7 = vmul.f32 %v1894_v0, %v2889_v60  ;;  %v1073_v29 = vadd.f32 %v1894_v0, %v2889_v60 }
 0x403   :  { %v1087_v36 = vmul.f32 %v1044_v2, %v2879_v45  ;;  %v1895_v13 = vpop.f32.mrb[30].mxu0  ;;  %1944 = vmatmul.mubr.f32.gmra.mrb[26].mxu1 %v1086_v6  ;;  %v1071_v18 = vadd.f32 %v1044_v2, %v2879_v45 }
 0x404   :  { %v1047_v50 = vpop.f32.mrb[31].mxu0  ;;  %2101 = vmatpush3.bf16.msra.mxu1 %v2924_v22  ;;  %v1090_v8 = vmul.f32 %v1895_v13, %v2896_v21  ;;  %v1074_v19 = vadd.f32 %v1895_v13, %v2896_v21  ;;  %v939_v22 = vld [vmem:[#allocation10 + $0x8] sm:$0xff] }
 0x405   :  { %v1088_v4 = vmul.f32 %v1047_v50, %v2886_v15  ;;  %1946 = vmatprep.mubr.f32.mxu1 %v1087_v36  ;;  %2094 = vmatprep.subr.bf16.mxu1 %v2930_v30  ;;  %v1072_v28 = vadd.f32 %v1047_v50, %v2886_v15 }
 0x407   :  { %1947 = vmatmul.mubr.f32.gmra.mrb[28].mxu1 %v1088_v4 }
 0x408   :  { %1949 = vmatprep.mubr.f32.mxu1 %v1089_v7  ;;  %2102 = vmatpush3.bf16.msra.mxu1 %v2930_v30  ;;  %v947_v7 = vld [vmem:[#allocation10 + $0x48] sm:$0xff] }
 0x409   :  { %2095 = vmatprep.subr.bf16.mxu1 %v2936_v33 }
 0x40b   :  { %1950 = vmatmul.mubr.f32.gmra.mrb[30].mxu1 %v1090_v8 }
 0x40c   :  { %2103 = vmatpush3.bf16.msra.mxu1 %v2936_v33  ;;  %1999 = vmatprep.mubr.f32.mxu1 %v1069_v10 }
 0x40f   :  { %2000 = vmatmul.mubr.f32.vlgmr.msra.gmra.mrb[26].mxu1 %v1070_v14 }
 0x410   :  { %2002 = vmatprep.mubr.f32.mxu1 %v1071_v18 }
 0x413   :  { %2003 = vmatmul.mubr.f32.gmra.mrb[28].mxu1 %v1072_v28 }
 0x414   :  { %2005 = vmatprep.mubr.f32.mxu1 %v1073_v29  ;;  %v946_v29 = vld [vmem:[#allocation10 + $0x40] sm:$0xff] }
 0x417   :  { %2006 = vmatmul.mubr.f32.gmra.mrb[30].mxu1 %v1074_v19 }
 0x4c2   :  { %v1930_v42 = vpop.f32.mrb[16].mxu1  ;;  %v1986_v23 = vpop.f32.mrb[32].mxu0 }
 0x4c3   :  { %v1308_v41 = vadd.f32 %v1986_v23, %v1930_v42  ;;  %v1157_v30 = vpop.f32.mrb[17].mxu1  ;;  %v1302_v3 = vpop.f32.mrb[33].mxu0 }
 0x4c4   :  { %v1303_v9 = vadd.f32 %v1302_v3, %v1157_v30 }
 0x4c5   :  { %v1382_v45 = vadd.f32 %v1308_v41, %v939_v22 }
 0x4c6   :  { %v1381_v25 = vadd.f32 %v1303_v9, %v938_v31  ;;  %v1933_v32 = vpop.f32.mrb[18].mxu1  ;;  %v1989_v15 = vpop.f32.mrb[34].mxu0 }
 0x4c7   :  { %v1318_v33 = vadd.f32 %v1989_v15, %v1933_v32  ;;  %v1167_v60 = vpop.f32.mrb[19].mxu1  ;;  %v1312_v46 = vpop.f32.mrb[35].mxu0  ;;  %vm1398_vm1 = vcmp.gt.f32.partialorder %v1382_v45, 0.0  ;;  %v1414_v21 = vmul.f32 0.2, %v1382_v45 }
 0x4c8   :  { %v1313_v34 = vadd.f32 %v1312_v46, %v1167_v60  ;;  %vm1397_vm2 = vcmp.gt.f32.partialorder %v1381_v25, 0.0  ;;  %v1413_v47 = vmul.f32 0.2, %v1381_v25  ;;  %v949_v46 = vld [vmem:[#allocation10 + $0x58] sm:$0xff] }
 0x4c9   :  { %v1384_v48 = vadd.f32 %v1318_v33, %v941_v43  ;;  %v2988_v49 = vsel %vm1398_vm1, %v1382_v45, %v1414_v21  ;;  %v948_v21 = vld [vmem:[#allocation10 + $0x50] sm:$0xff] }
 0x4ca   :  { %v1383_v37 = vadd.f32 %v1313_v34, %v940_v44  ;;  %v1936_v52 = vpop.f32.mrb[20].mxu1  ;;  %v1992_v55 = vpop.f32.mrb[36].mxu0  ;;  %v1446_v57 = vmul.f32 %v2988_v49, %v2988_v49  ;;  %v2992_v16 = vsel %vm1397_vm2, %v1381_v25, %v1413_v47 }
 0x4cb   :  { %v1328_v58 = vadd.f32 %v1992_v55, %v1936_v52  ;;  %v1177_v1 = vpop.f32.mrb[21].mxu1  ;;  %v1322_v62 = vpop.f32.mrb[37].mxu0  ;;  %v1445_v63 = vmul.f32 %v2992_v16, %v2992_v16  ;;  %vm1400_vm3 = vcmp.gt.f32.partialorder %v1384_v48, 0.0  ;;  %v1416_v59 = vmul.f32 0.2, %v1384_v48  ;;  %v951_v52 = vld [vmem:[#allocation10 + $0x68] sm:$0xff] }
 0x4cc   :  { %v1323_v54 = vadd.f32 %v1322_v62, %v1177_v1  ;;  %1463 = vadd.xlane.f32.xlu1 %v1446_v57  ;;  %vm1399_vm4 = vcmp.gt.f32.partialorder %v1383_v37, 0.0  ;;  %v1415_v5 = vmul.f32 0.2, %v1383_v37  ;;  %v950_v55 = vld [vmem:[#allocation10 + $0x60] sm:$0xff] }
 0x4cd   :  { %v1386_v40 = vadd.f32 %v1328_v58, %v943_v53  ;;  %1461 = vadd.xlane.f32.xlu0 %v1445_v63  ;;  %v2996_v11 = vsel %vm1400_vm3, %v1384_v48, %v1416_v59 }
 0x4ce   :  { %v1385_v56 = vadd.f32 %v1323_v54, %v942_v61  ;;  %v1939_v12 = vpop.f32.mrb[22].mxu1  ;;  %v1995_v26 = vpop.f32.mrb[38].mxu0  ;;  %v1448_v35 = vmul.f32 %v2996_v11, %v2996_v11  ;;  %v3000_v38 = vsel %vm1399_vm4, %v1383_v37, %v1415_v5  ;;  %v953_v54 = vld [vmem:[#allocation10 + $0x78] sm:$0xff] }
 0x4cf   :  { %v1338_v17 = vadd.f32 %v1995_v26, %v1939_v12  ;;  %v1187_v24 = vpop.f32.mrb[23].mxu1  ;;  %v1332_v39 = vpop.f32.mrb[39].mxu0  ;;  %v1447_v51 = vmul.f32 %v3000_v38, %v3000_v38  ;;  %vm1402_vm5 = vcmp.gt.f32.partialorder %v1386_v40, 0.0  ;;  %v1418_v6 = vmul.f32 0.2, %v1386_v40  ;;  %v952_v12 = vld [vmem:[#allocation10 + $0x70] sm:$0xff] }
 0x4d0   :  { %v1333_v0 = vadd.f32 %v1332_v39, %v1187_v24  ;;  %1467 = vadd.xlane.f32.xlu1 %v1448_v35  ;;  %vm1401_vm6 = vcmp.gt.f32.partialorder %v1385_v56, 0.0  ;;  %v1417_v2 = vmul.f32 0.2, %v1385_v56 }
 0x4d1   :  { %v1388_v36 = vadd.f32 %v1338_v17, %v945_v20  ;;  %1465 = vadd.xlane.f32.xlu0 %v1447_v51  ;;  %v3004_v13 = vsel %vm1402_vm5, %v1386_v40, %v1418_v6 }
 0x4d2   :  { %v1387_v50 = vadd.f32 %v1333_v0, %v944_v27  ;;  %v1942_v4 = vpop.f32.mrb[24].mxu1  ;;  %v1998_v8 = vpop.f32.mrb[40].mxu0  ;;  %v1450_v10 = vmul.f32 %v3004_v13, %v3004_v13  ;;  %v3008_v14 = vsel %vm1401_vm6, %v1385_v56, %v1417_v2 }
 0x4d3   :  { %v1348_v18 = vadd.f32 %v1998_v8, %v1942_v4  ;;  %v1197_v28 = vpop.f32.mrb[25].mxu1  ;;  %v1342_v19 = vpop.f32.mrb[41].mxu0  ;;  %v1449_v42 = vmul.f32 %v3008_v14, %v3008_v14  ;;  %vm1404_vm7 = vcmp.gt.f32.partialorder %v1388_v36, 0.0  ;;  %v1420_v22 = vmul.f32 0.2, %v1388_v36 }
 0x4d4   :  { %v1343_v23 = vadd.f32 %v1342_v19, %v1197_v28  ;;  %1471 = vadd.xlane.f32.xlu1 %v1450_v10  ;;  %vm1403_vm8 = vcmp.gt.f32.partialorder %v1387_v50, 0.0  ;;  %v1419_v41 = vmul.f32 0.2, %v1387_v50 }
 0x4d5   :  { %v1390_v30 = vadd.f32 %v1348_v18, %v947_v7  ;;  %1469 = vadd.xlane.f32.xlu0 %v1449_v42  ;;  %v3012_v31 = vsel %vm1404_vm7, %v1388_v36, %v1420_v22 }
 0x4d6   :  { %v1389_v3 = vadd.f32 %v1343_v23, %v946_v29  ;;  %v1452_v9 = vmul.f32 %v3012_v31, %v3012_v31  ;;  %v3016_v45 = vsel %vm1403_vm8, %v1387_v50, %v1419_v41 }
 0x4d7   :  { %v1451_v25 = vmul.f32 %v3016_v45, %v3016_v45  ;;  %vm1406_vm9 = vcmp.gt.f32.partialorder %v1390_v30, 0.0  ;;  %v1422_v32 = vmul.f32 0.2, %v1390_v30 }
 0x4d8   :  { %1475 = vadd.xlane.f32.xlu1 %v1452_v9  ;;  %vm1405_vm10 = vcmp.gt.f32.partialorder %v1389_v3, 0.0  ;;  %v1421_v43 = vmul.f32 0.2, %v1389_v3 }
 0x4d9   :  { %1473 = vadd.xlane.f32.xlu0 %v1451_v25  ;;  %v3020_v15 = vsel %vm1406_vm9, %v1390_v30, %v1422_v32 }
 0x4da   :  { %v1454_v33 = vmul.f32 %v3020_v15, %v3020_v15  ;;  %v3024_v60 = vsel %vm1405_vm10, %v1389_v3, %v1421_v43 }
 0x4db   :  { %v1453_v44 = vmul.f32 %v3024_v60, %v3024_v60 }
 0x4dc   :  { %1479 = vadd.xlane.f32.xlu1 %v1454_v33 }
 0x4dd   :  { %1477 = vadd.xlane.f32.xlu0 %v1453_v44 }
 0x4e2   :  { %v2001_v34 = vpop.f32.mrb[26].mxu1 }
 0x4e3   :  { %v1392_v47 = vadd.f32 %v2001_v34, %v949_v46  ;;  %v1352_v48 = vpop.f32.mrb[27].mxu1 }
 0x4e4   :  { %v1391_v37 = vadd.f32 %v1352_v48, %v948_v21 }
 0x4e5   :  { %v1424_v53 = vmul.f32 0.2, %v1392_v47  ;;  %vm1408_vm11 = vcmp.gt.f32.partialorder %v1392_v47, 0.0 }
 0x4e6   :  { %v1423_v57 = vmul.f32 0.2, %v1391_v37  ;;  %v2004_v58 = vpop.f32.mrb[28].mxu1  ;;  %vm1407_vm12 = vcmp.gt.f32.partialorder %v1391_v37, 0.0 }
 0x4e7   :  { %v1394_v1 = vadd.f32 %v2004_v58, %v951_v52  ;;  %v1362_v61 = vpop.f32.mrb[29].mxu1  ;;  %v3028_v62 = vsel %vm1408_vm11, %v1392_v47, %v1424_v53 }
 0x4e8   :  { %v1393_v63 = vadd.f32 %v1362_v61, %v950_v55  ;;  %v1456_v59 = vmul.f32 %v3028_v62, %v3028_v62  ;;  %v3032_v5 = vsel %vm1407_vm12, %v1391_v37, %v1423_v57 }
 0x4e9   :  { %v1426_v40 = vmul.f32 0.2, %v1394_v1  ;;  %v1455_v56 = vmul.f32 %v3032_v5, %v3032_v5  ;;  %vm1410_vm13 = vcmp.gt.f32.partialorder %v1394_v1, 0.0 }
 0x4ea   :  { %v1425_v20 = vmul.f32 0.2, %v1393_v63  ;;  %1483 = vadd.xlane.f32.xlu1 %v1456_v59  ;;  %v2007_v26 = vpop.f32.mrb[30].mxu1  ;;  %vm1409_vm14 = vcmp.gt.f32.partialorder %v1393_v63, 0.0 }
 0x4eb   :  { %v1396_v35 = vadd.f32 %v2007_v26, %v953_v54  ;;  %1481 = vadd.xlane.f32.xlu0 %v1455_v56  ;;  %v1372_v17 = vpop.f32.mrb[31].mxu1  ;;  %v3036_v24 = vsel %vm1410_vm13, %v1394_v1, %v1426_v40 }
 0x4ec   :  { %v1395_v27 = vadd.f32 %v1372_v17, %v952_v12  ;;  %v1458_v39 = vmul.f32 %v3036_v24, %v3036_v24  ;;  %v3040_v51 = vsel %vm1409_vm14, %v1393_v63, %v1425_v20 }
 0x4ed   :  { %v1428_v6 = vmul.f32 0.2, %v1396_v35  ;;  %v1457_v0 = vmul.f32 %v3040_v51, %v3040_v51  ;;  %vm1412_vm15 = vcmp.gt.f32.partialorder %v1396_v35, 0.0 }
 0x4ee   :  { %v1427_v2 = vmul.f32 0.2, %v1395_v27  ;;  %1487 = vadd.xlane.f32.xlu1 %v1458_v39  ;;  %vm1411_vm0 = vcmp.gt.f32.partialorder %v1395_v27, 0.0 }
 0x4ef   :  { %1485 = vadd.xlane.f32.xlu0 %v1457_v0  ;;  %v3044_v36 = vsel %vm1412_vm15, %v1396_v35, %v1428_v6 }
 0x4f0   :  { %v1460_v50 = vmul.f32 %v3044_v36, %v3044_v36  ;;  %v3048_v4 = vsel %vm1411_vm0, %v1395_v27, %v1427_v2 }
 0x4f1   :  { %v1459_v7 = vmul.f32 %v3048_v4, %v3048_v4 }
 0x4f2   :  { %1491 = vadd.xlane.f32.xlu1 %v1460_v50 }
 0x4f3   :  { %1489 = vadd.xlane.f32.xlu0 %v1459_v7 }
 0x4f4   :  { %2340 = shalt.err (!%p2337_p2)
}
 0x4f5   :  { %s2341_s30 = scalar_lea.hbm %s3106_s8, 2048 }
 0x4f6   :  { %p2342_p3 = scmp.ne.s32.totalorder %s3106_s8, %s2341_s30  ;;  %p2345_p4 = scmp.lt.u32.totalorder %s2341_s30, %s3106_s8 }
 0x4f8   :  { %p2347_p5 = pnand %p2345_p4, %p2342_p3 }
 0x4fa   :  { %2350 = shalt.err (!%p2347_p5)
}
 0x4fb   :  { %1568 = dma.vmem_to_hbm [thread:$0]  %s1563_s27, 2048, %s3106_s8, [#allocation4], %s2384_s19, %s2384_s19, %s2385_s20  }
 0x4fc   :  { %s2393_s8 = smov [#allocation12]  }
 0x4fd   :  { %s1574_s12 = sshll.u32 %s2393_s8, 4  ;;  %s1575_s12 = int_to_ptr.vmem [resolvable:$true] %s1574_s12 }
 0x4fe   :  { %s2351_s1 = scalar_lea.vmem %s1575_s12, 2048  ;;  %p2356_p7 = scmp.lt.s32.totalorder %s1575_s12, %s1575_s12 }
 0x4ff   :  { %p2352_p6 = scmp.ne.s32.totalorder %s1575_s12, %s2351_s1  ;;  %p2357_p8 = scmp.lt.s32.totalorder %s2351_s1, %s2351_s1 }
 0x501   :  { %p2358_p9 = por %p2357_p8, %p2356_p7 }
 0x503   :  { %p2359_p10 = pnand %p2358_p9, %p2352_p6 }
 0x559   :  { %v1464_v8 = vpop.xlane.xlu1 %1463 }
 0x55a   :  { %v1494_v10 = vmax.f32 %v1464_v8, 1e-24  ;;  %v1462_v18 = vpop.xlane.xlu0 %1461 }
 0x55b   :  { %v1493_v28 = vmax.f32 %v1462_v18, 1e-24 }
 0x55c   :  { %2187 = vrsqrt.f32 %v1494_v10 }
 0x55d   :  { %2189 = vrsqrt.f32 %v1493_v28  ;;  %v1468_v29 = vpop.xlane.xlu1 %1467 }
 0x55e   :  { %v1496_v19 = vmax.f32 %v1468_v29, 1e-24  ;;  %v1466_v42 = vpop.xlane.xlu0 %1465 }
 0x55f   :  { %v1495_v22 = vmax.f32 %v1466_v42, 1e-24 }
 0x560   :  { %2191 = vrsqrt.f32 %v1496_v19 }
 0x561   :  { %2193 = vrsqrt.f32 %v1495_v22  ;;  %v1472_v23 = vpop.xlane.xlu1 %1471 }
 0x562   :  { %v1498_v41 = vmax.f32 %v1472_v23, 1e-24  ;;  %v1470_v30 = vpop.xlane.xlu0 %1469 }
 0x563   :  { %v1497_v3 = vmax.f32 %v1470_v30, 1e-24 }
 0x564   :  { %2195 = vrsqrt.f32 %v1498_v41 }
 0x565   :  { %2197 = vrsqrt.f32 %v1497_v3  ;;  %v1476_v9 = vpop.xlane.xlu1 %1475 }
 0x566   :  { %v2188_v25 = vpop.eup %2187  ;;  %v1500_v32 = vmax.f32 %v1476_v9, 1e-24  ;;  %v1474_v43 = vpop.xlane.xlu0 %1473 }
 0x567   :  { %v2190_v33 = vpop.eup %2189  ;;  %v1526_v44 = vmul.f32 %v2188_v25, %v2988_v49  ;;  %v1499_v46 = vmax.f32 %v1474_v43, 1e-24 }
 0x568   :  { %v1525_v21 = vmul.f32 %v2190_v33, %v2992_v16  ;;  %2199 = vrsqrt.f32 %v1500_v32 }
 0x569   :  { %1542 = vst [vmem:[#allocation12 + $0x8] sm:$0xff] %v1526_v44  ;;  %2201 = vrsqrt.f32 %v1499_v46  ;;  %v1480_v34 = vpop.xlane.xlu1 %1479 }
 0x56a   :  { %v2192_v47 = vpop.eup %2191  ;;  %1541 = vst [vmem:[#allocation12] sm:$0xff] %v1525_v21  ;;  %v1502_v48 = vmax.f32 %v1480_v34, 1e-24  ;;  %v1478_v37 = vpop.xlane.xlu0 %1477 }
 0x56b   :  { %v2194_v52 = vpop.eup %2193  ;;  %v1528_v53 = vmul.f32 %v2192_v47, %v2996_v11  ;;  %v1501_v55 = vmax.f32 %v1478_v37, 1e-24 }
 0x56c   :  { %v1527_v57 = vmul.f32 %v2194_v52, %v3000_v38  ;;  %2203 = vrsqrt.f32 %v1502_v48 }
 0x56d   :  { %1544 = vst [vmem:[#allocation12 + $0x18] sm:$0xff] %v1528_v53  ;;  %2205 = vrsqrt.f32 %v1501_v55 }
 0x56e   :  { %v2196_v49 = vpop.eup %2195  ;;  %1543 = vst [vmem:[#allocation12 + $0x10] sm:$0xff] %v1527_v57 }
 0x56f   :  { %v2198_v16 = vpop.eup %2197  ;;  %v1530_v58 = vmul.f32 %v2196_v49, %v3004_v13 }
 0x570   :  { %v1529_v1 = vmul.f32 %v2198_v16, %v3008_v14 }
 0x571   :  { %1546 = vst [vmem:[#allocation12 + $0x28] sm:$0xff] %v1530_v58 }
 0x572   :  { %v2200_v61 = vpop.eup %2199  ;;  %1545 = vst [vmem:[#allocation12 + $0x20] sm:$0xff] %v1529_v1 }
 0x573   :  { %v2202_v63 = vpop.eup %2201  ;;  %v1532_v59 = vmul.f32 %v2200_v61, %v3012_v31 }
 0x574   :  { %v1531_v11 = vmul.f32 %v2202_v63, %v3016_v45 }
 0x575   :  { %1548 = vst [vmem:[#allocation12 + $0x38] sm:$0xff] %v1532_v59 }
 0x576   :  { %v2204_v38 = vpop.eup %2203  ;;  %1547 = vst [vmem:[#allocation12 + $0x30] sm:$0xff] %v1531_v11 }
 0x577   :  { %v2206_v54 = vpop.eup %2205  ;;  %v1534_v40 = vmul.f32 %v2204_v38, %v3020_v15  ;;  %v1484_v56 = vpop.xlane.xlu1 %1483 }
 0x578   :  { %v1533_v12 = vmul.f32 %v2206_v54, %v3024_v60  ;;  %v1504_v13 = vmax.f32 %v1484_v56, 1e-24  ;;  %v1482_v20 = vpop.xlane.xlu0 %1481 }
 0x579   :  { %1550 = vst [vmem:[#allocation12 + $0x48] sm:$0xff] %v1534_v40  ;;  %v1503_v14 = vmax.f32 %v1482_v20, 1e-24 }
 0x57a   :  { %1549 = vst [vmem:[#allocation12 + $0x40] sm:$0xff] %v1533_v12  ;;  %2207 = vrsqrt.f32 %v1504_v13 }
 0x57b   :  { %2209 = vrsqrt.f32 %v1503_v14  ;;  %v1488_v26 = vpop.xlane.xlu1 %1487 }
 0x57c   :  { %v1506_v31 = vmax.f32 %v1488_v26, 1e-24  ;;  %v1486_v35 = vpop.xlane.xlu0 %1485 }
 0x57d   :  { %v1505_v45 = vmax.f32 %v1486_v35, 1e-24 }
 0x57e   :  { %2211 = vrsqrt.f32 %v1506_v31 }
 0x57f   :  { %2213 = vrsqrt.f32 %v1505_v45  ;;  %v1492_v17 = vpop.xlane.xlu1 %1491 }
 0x580   :  { %v1508_v27 = vmax.f32 %v1492_v17, 1e-24  ;;  %v1490_v39 = vpop.xlane.xlu0 %1489 }
 0x581   :  { %v1507_v15 = vmax.f32 %v1490_v39, 1e-24 }
 0x582   :  { %2215 = vrsqrt.f32 %v1508_v27 }
 0x583   :  { %2217 = vrsqrt.f32 %v1507_v15 }
 0x584   :  { %v2208_v60 = vpop.eup %2207 }
 0x585   :  { %v2210_v6 = vpop.eup %2209  ;;  %v1536_v0 = vmul.f32 %v2208_v60, %v3028_v62 }
 0x586   :  { %v1535_v2 = vmul.f32 %v2210_v6, %v3032_v5 }
 0x587   :  { %1552 = vst [vmem:[#allocation12 + $0x58] sm:$0xff] %v1536_v0 }
 0x588   :  { %v2212_v50 = vpop.eup %2211  ;;  %1551 = vst [vmem:[#allocation12 + $0x50] sm:$0xff] %v1535_v2 }
 0x589   :  { %v2214_v7 = vpop.eup %2213  ;;  %v1538_v8 = vmul.f32 %v2212_v50, %v3036_v24 }
 0x58a   :  { %v1537_v10 = vmul.f32 %v2214_v7, %v3040_v51 }
 0x58b   :  { %1554 = vst [vmem:[#allocation12 + $0x68] sm:$0xff] %v1538_v8 }
 0x58c   :  { %v2216_v18 = vpop.eup %2215  ;;  %1553 = vst [vmem:[#allocation12 + $0x60] sm:$0xff] %v1537_v10 }
 0x58d   :  { %v2218_v28 = vpop.eup %2217  ;;  %v1540_v29 = vmul.f32 %v2216_v18, %v3044_v36 }
 0x58e   :  { %v1539_v62 = vmul.f32 %v2218_v28, %v3048_v4 }
 0x58f   :  { %1556 = vst [vmem:[#allocation12 + $0x78] sm:$0xff] %v1540_v29 }
 0x590   :  { %1555 = vst [vmem:[#allocation12 + $0x70] sm:$0xff] %v1539_v62 }
 0x591   :  { %2362 = shalt.err (!%p2359_p10)
}
 0x592   :  { %s2363_s17 = scalar_lea.hbm %s3107_s9, 2048 }
 0x593   :  { %p2364_p11 = scmp.ne.s32.totalorder %s3107_s9, %s2363_s17  ;;  %p2367_p12 = scmp.lt.u32.totalorder %s2363_s17, %s3107_s9 }
 0x595   :  { %p2369_p13 = pnand %p2367_p12, %p2364_p11 }
 0x597   :  { %2372 = shalt.err (!%p2369_p13)
}
 0x598   :  { %1580 = dma.vmem_to_hbm [thread:$0]  %s1575_s12, 2048, %s3107_s9, [#allocation13], %s2384_s19, %s2384_s19, %s2385_s20  }
 0x599   :  { %2379 = dma.done.wait [#allocation4], 2048  }
 0x59a   :  { %2380 = vsyncadd [#allocation4], 4294965248 }
 0x59b   :  { %2381 = dma.done.wait [#allocation13], 2048  }
 0x59c   :  { %2382 = vsyncadd [#allocation13], 4294965248 }
 0x59d   :  { %1587 = vsyncpa [#allocation3], 1 }
 0x59e   :  { %1588 = vsyncpa [#allocation6], 1 }
 0x59f   :  { %1589 = vsyncpa [#allocation9], 1 }
 0x5a0   :  { %1590 = vsyncpa [#allocation4], 1 }
 0x5a1   :  { %1591 = vsyncpa [#allocation13], 1 }

</bundles_post_ra>
